<compile_context>
chip_gen: v6e
topology: v6e:2x2x1
jax: 0.10.0
libtpu: 0.0.40
codegen_flags: <defaults>
</compile_context>

<pallas_src>
import functools

import jax
import jax.numpy as jnp
from jax import lax
from jax.experimental import pallas as pl
from jax.experimental.pallas import tpu as pltpu


_TM_CAP = 4096            # rows per grid step for large batches (~2.5 MB HBM/step, f32)
_MIN_PARALLEL_STEPS = 8   # only shard the batch axis across v7x's 2 TCs with >= 8 steps
_VMEM_LIMIT = 48 << 20    # below v7x's 64 MiB physical VMEM; ample for tm=4096 f32 blocks


def _round_up(x, m):
    return (x + m - 1) // m * m


def _choose_tm(n):
    """Row-tile policy: single full-array step for small/medium N; for large N
    use big tiles, shrinking only as needed to give 2 TensorCores >=4 steps each."""
    if n <= _TM_CAP:
        return n                                   # grid=(1,), no padding ever
    if n >= _MIN_PARALLEL_STEPS * _TM_CAP:
        return _TM_CAP
    return max(1024, _round_up(pl.cdiv(n, _MIN_PARALLEL_STEPS), 8))


def _choose_pack(n, tm, d):
    """Rows packed per lane-dense output row (0 = disabled)."""
    if d % 128 == 0:
        return 0                                   # output already lane-dense
    if n % tm != 0:
        return 0                                   # partial final block: keep simple masked store
    single_step = (n == tm)
    for pack in (16, 8, 4):                        # prefer 512/256/128-lane packed rows
        if pack * d < 128 or pack * d > 512:
            continue
        if tm % pack:
            continue
        if single_step or (tm // pack) % 8 == 0:
            return pack
    return 0


def _make_kernel(num_embed, embed_dim, pack):
    lane_dense = pack > 0

    def kernel(*refs):
        e_refs = refs[:num_embed]
        w_ref, b_ref, o_ref, x_ref = refs[num_embed:num_embed + 4]

        # Fused concat: stage the num_embed (tm, d) tiles into one (tm, K)
        # VMEM scratch via lane-offset stores, then a single K-deep matmul
        # (K = 128 for embed_dim=32, num_embed=4 -> one vmatmul push instead of
        # four plus three partial-sum adds; fills v5e's 128-deep MXU).
        for k in range(num_embed):
            x_ref[:, k * embed_dim:(k + 1) * embed_dim] = e_refs[k][...]
        y = jnp.dot(x_ref[...], w_ref[...], preferred_element_type=jnp.float32)

        # Bias + ReLU (f32 epilogue; v5e has no bf16 VPU/EUP).
        y = jnp.maximum(y + b_ref[...], 0.0)

        # L2 normalize (== F.normalize(p=2, dim=-1, eps=1e-12)):
        # y * rsqrt(max(||y||^2, 1e-24)) -- EUP rsqrt, no VPU divide.
        # Note(v7x): this epilogue runs at d-lane width; if the VPU ever
        # becomes the binding slot it could be moved onto the packed layout.
        sq = jnp.sum(y * y, axis=-1, keepdims=True)
        out = y * lax.rsqrt(jnp.maximum(sq, 1e-24))

        # TODO(synk): training-mode dropout (prng_random_bits + 1/(1-p) rescale)
        #             not implemented -- eval path (identity) only.

        if lane_dense:
            # Pack `pack` consecutive rows into one 128..512-lane row so the
            # output store is full-width (unmasked vst) and writeback DMAs are
            # wide; the wrapper reshapes back row-major for free.
            out = out.reshape(out.shape[0] // pack, pack * out.shape[1])

        o_ref[...] = out.astype(o_ref.dtype)

    return kernel


@functools.partial(jax.jit, static_argnames=("tm", "pack", "parallel"))
def _forward_impl(embeds, weight_t, bias, *, tm, pack, parallel):
    num_embed = len(embeds)
    n, d = embeds[0].shape
    in_dtype = embeds[0].dtype
    lane_dense = pack > 0
    grid_steps = pl.cdiv(n, tm)

    weight_t = weight_t.astype(in_dtype)            # match MXU operand dtypes
    bias2d = bias.reshape(1, d).astype(jnp.float32)  # bias/epilogue stay f32

    in_specs = [pl.BlockSpec((tm, d), lambda i: (i, 0)) for _ in range(num_embed)]
    # Weight/bias: constant block index -> fetched once, VMEM-resident across the grid.
    in_specs += [
        pl.BlockSpec((num_embed * d, d), lambda i: (0, 0)),
        pl.BlockSpec((1, d), lambda i: (0, 0)),
    ]

    if lane_dense:
        rows = (grid_steps * tm) // pack             # == n // pack (pack>0 implies tm | n)
        out_shape = jax.ShapeDtypeStruct((rows, pack * d), in_dtype)
        out_spec = pl.BlockSpec((tm // pack, pack * d), lambda i: (i, 0))
    else:
        out_shape = jax.ShapeDtypeStruct((n, d), in_dtype)
        out_spec = pl.BlockSpec((tm, d), lambda i: (i, 0))

    out = pl.pallas_call(
        _make_kernel(num_embed, d, pack),
        out_shape=out_shape,
        grid_spec=pltpu.PrefetchScalarGridSpec(
            num_scalar_prefetch=0,
            grid=(grid_steps,),
            in_specs=in_specs,
            out_specs=out_spec,
            scratch_shapes=[pltpu.VMEM((tm, num_embed * d), in_dtype)],
        ),
        compiler_params=pltpu.CompilerParams(
            dimension_semantics=("parallel" if parallel else "arbitrary",),
            vmem_limit_bytes=_VMEM_LIMIT,
        ),
    )(*embeds, weight_t, bias2d)

    if lane_dense:
        out = out.reshape(grid_steps * tm, d)        # row-major un-packing
    return out[:n]


# One-time cached probe of the lane-dense (sublane->lane reshape) variant.
_lane_dense_ok = {}


def _lane_dense_supported(embeds, weight_t, bias, *, tm, pack, parallel):
    """AOT-compile probe (no execution, no host sync).  Only compilation is
    guarded here, so genuine runtime failures on the real path can never be
    swallowed; a non-reshape compile failure would resurface on the fallback."""
    key = (tuple(e.shape for e in embeds), str(embeds[0].dtype), tm, pack, parallel)
    hit = _lane_dense_ok.get(key)
    if hit is not None:
        return hit
    structs = (
        tuple(jax.ShapeDtypeStruct(e.shape, e.dtype) for e in embeds),
        jax.ShapeDtypeStruct(weight_t.shape, weight_t.dtype),
        jax.ShapeDtypeStruct(bias.shape, bias.dtype),
    )
    try:
        _forward_impl.lower(*structs, tm=tm, pack=pack, parallel=parallel).compile()
        ok = True
    except pltpu.LoweringException:
        ok = False
    except Exception:   # other compile-time rejections of the packed layout
        ok = False
    _lane_dense_ok[key] = ok
    return ok


def content_agg_forward(embed_list, weight_t, bias, *, tm=None):
    """Fused Content_Agg forward (eval mode).

    embed_list: list/tuple of (N, embed_dim) arrays (f32 or bf16)
    weight_t:   (embed_dim * num_embed, embed_dim) -- transposed fc weight
    bias:       (embed_dim,)
    """
    embeds = tuple(jnp.asarray(e) for e in embed_list)
    n, d = embeds[0].shape
    if tm is None:
        tm = _choose_tm(n)
    tm = int(min(max(tm, 1), n))
    grid_steps = pl.cdiv(n, tm)
    parallel = grid_steps >= _MIN_PARALLEL_STEPS

    pack = _choose_pack(n, tm, d)
    if pack and not _lane_dense_supported(embeds, weight_t, bias,
                                          tm=tm, pack=pack, parallel=parallel):
        pack = 0

    return _forward_impl(embeds, weight_t, bias, tm=tm, pack=pack, parallel=parallel)


def reference_forward(embed_list, weight_t, bias):
    """Pure-JAX reference matching the PyTorch forward (eval mode)."""
    x = jnp.concatenate([jnp.asarray(e, jnp.float32) for e in embed_list], axis=-1)
    y = jnp.dot(x, weight_t.astype(jnp.float32),
                precision=jax.lax.Precision.HIGHEST) + bias.astype(jnp.float32)
    y = jnp.maximum(y, 0.0)
    norm = jnp.sqrt(jnp.sum(y * y, axis=-1, keepdims=True))
    return y / jnp.maximum(norm, 1e-12)


if __name__ == "__main__":
    # Shapes consistent with the module: embed_dim=32, num_embed=4
    # -> fc: Linear(128, 32); batch N=256 nodes.
    embed_dim = 32
    num_embed = 4
    batch = 256
    dropout = 0.5  # unused at inference

    key = jax.random.PRNGKey(0)
    keys = jax.random.split(key, num_embed + 2)

    embed_list = [
        jax.random.normal(keys[i], (batch, embed_dim), dtype=jnp.float32)
        for i in range(num_embed)
    ]

    in_dim = embed_dim * num_embed
    bound = 1.0 / (in_dim ** 0.5)
    weight = jax.random.uniform(
        keys[num_embed], (embed_dim, in_dim), minval=-bound, maxval=bound,
        dtype=jnp.float32)
    bias = jax.random.uniform(
        keys[num_embed + 1], (embed_dim,), minval=-bound, maxval=bound,
        dtype=jnp.float32)
    weight_t = weight.T  # (K, D)

    # Full batch: single grid step, lane-dense output if this Mosaic supports it.
    # (tolerance accounts for TPU f32 matmul precision differences between the
    #  XLA reference and the in-kernel MXU path.)
    out = jax.block_until_ready(content_agg_forward(embed_list, weight_t, bias))
    ref = reference_forward(embed_list, weight_t, bias)
    assert out.shape == (batch, embed_dim)
    assert jnp.allclose(out, ref, atol=2e-3, rtol=2e-3), "mismatch vs reference"

    # Ragged batch: full-array blocks, no padding, no HBM pad copy.
    ragged = [e[:100] for e in embed_list]
    out2 = jax.block_until_ready(content_agg_forward(ragged, weight_t, bias))
    ref2 = reference_forward(ragged, weight_t, bias)
    assert out2.shape == (100, embed_dim)
    assert jnp.allclose(out2, ref2, atol=2e-3, rtol=2e-3), "ragged mismatch"

    # bf16 input path (halves the dominant HBM read traffic; f32 accumulation).
    embed_bf16 = [e.astype(jnp.bfloat16) for e in embed_list]
    out3 = jax.block_until_ready(content_agg_forward(embed_bf16, weight_t, bias))
    assert out3.shape == (batch, embed_dim) and out3.dtype == jnp.bfloat16
    assert jnp.allclose(out3.astype(jnp.float32), ref, atol=5e-2), "bf16 mismatch"

    print("KERNEL_OK")
</pallas_src>

<mosaic_0001>
module attributes {stable_mosaic.version = 11 : i64} {
  func.func @kernel(%arg0: i32, %arg1: memref<256x32xf32, #tpu.memory_space<vmem>>, %arg2: memref<256x32xf32, #tpu.memory_space<vmem>>, %arg3: memref<256x32xf32, #tpu.memory_space<vmem>>, %arg4: memref<256x32xf32, #tpu.memory_space<vmem>>, %arg5: memref<128x32xf32, #tpu.memory_space<vmem>>, %arg6: memref<1x32xf32, #tpu.memory_space<vmem>>, %arg7: memref<256x32xf32, #tpu.memory_space<vmem>>, %arg8: memref<256x128xf32, #tpu.memory_space<vmem>>) attributes {dimension_semantics = [#tpu.dimension_semantics<arbitrary>], iteration_bounds = array<i64: 1>, scalar_prefetch = 0 : i64, scratch_operands = 1 : i64, tpu.core_type = #tpu.core_type<tc>, window_params = [{transform_indices = @transform_0, window_bounds = array<i64: 256, 32>}, {transform_indices = @transform_1, window_bounds = array<i64: 256, 32>}, {transform_indices = @transform_2, window_bounds = array<i64: 256, 32>}, {transform_indices = @transform_3, window_bounds = array<i64: 256, 32>}, {pipeline_mode = #tpu.pipeline_mode<synchronous>, transform_indices = @transform_4, window_bounds = array<i64: 128, 32>}, {pipeline_mode = #tpu.pipeline_mode<synchronous>, transform_indices = @transform_5, window_bounds = array<i64: 1, 32>}, {transform_indices = @transform_6, window_bounds = array<i64: 256, 32>}]} {
    %c0 = arith.constant 0 : index
    %c0_0 = arith.constant 0 : index
    %0 = vector.load %arg1[%c0, %c0_0] : memref<256x32xf32, #tpu.memory_space<vmem>>, vector<256x32xf32>
    %c0_1 = arith.constant 0 : index
    %c0_2 = arith.constant 0 : index
    %1 = vector.load %arg8[%c0_1, %c0_2] : memref<256x128xf32, #tpu.memory_space<vmem>>, vector<256x32xf32>
    tpu.vector_store %arg8[%c0_1, %c0_2], %0 {strides = array<i32>} : memref<256x128xf32, #tpu.memory_space<vmem>>, vector<256x32xf32>,
    %c0_3 = arith.constant 0 : index
    %c0_4 = arith.constant 0 : index
    %2 = vector.load %arg2[%c0_3, %c0_4] : memref<256x32xf32, #tpu.memory_space<vmem>>, vector<256x32xf32>
    %c0_5 = arith.constant 0 : index
    %c32 = arith.constant 32 : index
    %3 = vector.load %arg8[%c0_5, %c32] : memref<256x128xf32, #tpu.memory_space<vmem>>, vector<256x32xf32>
    tpu.vector_store %arg8[%c0_5, %c32], %2 {strides = array<i32>} : memref<256x128xf32, #tpu.memory_space<vmem>>, vector<256x32xf32>,
    %c0_6 = arith.constant 0 : index
    %c0_7 = arith.constant 0 : index
    %4 = vector.load %arg3[%c0_6, %c0_7] : memref<256x32xf32, #tpu.memory_space<vmem>>, vector<256x32xf32>
    %c0_8 = arith.constant 0 : index
    %c64 = arith.constant 64 : index
    %5 = vector.load %arg8[%c0_8, %c64] : memref<256x128xf32, #tpu.memory_space<vmem>>, vector<256x32xf32>
    tpu.vector_store %arg8[%c0_8, %c64], %4 {strides = array<i32>} : memref<256x128xf32, #tpu.memory_space<vmem>>, vector<256x32xf32>,
    %c0_9 = arith.constant 0 : index
    %c0_10 = arith.constant 0 : index
    %6 = vector.load %arg4[%c0_9, %c0_10] : memref<256x32xf32, #tpu.memory_space<vmem>>, vector<256x32xf32>
    %c0_11 = arith.constant 0 : index
    %c96 = arith.constant 96 : index
    %7 = vector.load %arg8[%c0_11, %c96] : memref<256x128xf32, #tpu.memory_space<vmem>>, vector<256x32xf32>
    tpu.vector_store %arg8[%c0_11, %c96], %6 {strides = array<i32>} : memref<256x128xf32, #tpu.memory_space<vmem>>, vector<256x32xf32>,
    %c0_12 = arith.constant 0 : index
    %c0_13 = arith.constant 0 : index
    %8 = vector.load %arg8[%c0_12, %c0_13] : memref<256x128xf32, #tpu.memory_space<vmem>>, vector<256x128xf32>
    %c0_14 = arith.constant 0 : index
    %c0_15 = arith.constant 0 : index
    %9 = vector.load %arg5[%c0_14, %c0_15] : memref<128x32xf32, #tpu.memory_space<vmem>>, vector<128x32xf32>
    %cst = arith.constant dense<0.000000e+00> : vector<256x32xf32>
    %10 = tpu.matmul %8, %9, %cst {dimension_numbers = #tpu.dot_dimension_numbers<[1], [0], [0], [1], [0, 0, 1, 1], [], []>} : vector<256x128xf32>, vector<128x32xf32>, vector<256x32xf32> -> vector<256x32xf32>
    %c0_16 = arith.constant 0 : index
    %c0_17 = arith.constant 0 : index
    %11 = vector.load %arg6[%c0_16, %c0_17] : memref<1x32xf32, #tpu.memory_space<vmem>>, vector<1x32xf32>
    %12 = vector.broadcast %11 : vector<1x32xf32> to vector<256x32xf32>
    %13 = arith.addf %10, %12 : vector<256x32xf32>
    %cst_18 = arith.constant 0.000000e+00 : f32
    %14 = vector.broadcast %cst_18 : f32 to vector<256x32xf32>
    %15 = arith.maximumf %13, %14 : vector<256x32xf32>
    %16 = arith.mulf %15, %15 : vector<256x32xf32>
    %cst_19 = arith.constant dense<0.000000e+00> : vector<256xf32>
    %17 = vector.multi_reduction <add>, %16, %cst_19 [1] : vector<256x32xf32> to vector<256xf32>
    %18 = vector.shape_cast %17 : vector<256xf32> to vector<256x1xf32>
    %cst_20 = arith.constant 1.000000e-24 : f32
    %19 = vector.broadcast %cst_20 : f32 to vector<256x1xf32>
    %20 = arith.maximumf %18, %19 : vector<256x1xf32>
    %21 = math.rsqrt %20 : vector<256x1xf32>
    %22 = vector.broadcast %21 : vector<256x1xf32> to vector<256x32xf32>
    %23 = arith.mulf %15, %22 : vector<256x32xf32>
    %c0_21 = arith.constant 0 : index
    %c0_22 = arith.constant 0 : index
    %24 = vector.load %arg7[%c0_21, %c0_22] : memref<256x32xf32, #tpu.memory_space<vmem>>, vector<256x32xf32>
    tpu.vector_store %arg7[%c0_21, %c0_22], %23 {strides = array<i32>} : memref<256x32xf32, #tpu.memory_space<vmem>>, vector<256x32xf32>,
    return
  }
  func.func @transform_0(%arg0: i32) -> (i32, i32) {
    %c0_i32 = arith.constant 0 : i32
    %c0_i32_0 = arith.constant 0 : i32
    return %arg0, %c0_i32 : i32, i32
  }
  func.func @transform_1(%arg0: i32) -> (i32, i32) {
    %c0_i32 = arith.constant 0 : i32
    %c0_i32_0 = arith.constant 0 : i32
    return %arg0, %c0_i32 : i32, i32
  }
  func.func @transform_2(%arg0: i32) -> (i32, i32) {
    %c0_i32 = arith.constant 0 : i32
    %c0_i32_0 = arith.constant 0 : i32
    return %arg0, %c0_i32 : i32, i32
  }
  func.func @transform_3(%arg0: i32) -> (i32, i32) {
    %c0_i32 = arith.constant 0 : i32
    %c0_i32_0 = arith.constant 0 : i32
    return %arg0, %c0_i32 : i32, i32
  }
  func.func @transform_4(%arg0: i32) -> (i32, i32) {
    %c0_i32 = arith.constant 0 : i32
    %c0_i32_0 = arith.constant 0 : i32
    %c0_i32_1 = arith.constant 0 : i32
    return %c0_i32, %c0_i32_0 : i32, i32
  }
  func.func @transform_5(%arg0: i32) -> (i32, i32) {
    %c0_i32 = arith.constant 0 : i32
    %c0_i32_0 = arith.constant 0 : i32
    %c0_i32_1 = arith.constant 0 : i32
    return %c0_i32, %c0_i32_0 : i32, i32
  }
  func.func @transform_6(%arg0: i32) -> (i32, i32) {
    %c0_i32 = arith.constant 0 : i32
    %c0_i32_0 = arith.constant 0 : i32
    return %arg0, %c0_i32 : i32, i32
  }
}

</mosaic_0001>

<bundles_post_ra>
// kernel: _forward_impl.1
= control target key start
LH: loop header
LB: loop body
LE: loop exit
PB: predicated region body
PF: predicated region fallthrough
CT: control target
= control target key end

     0   :  { %s1467_s25 = smov 32   ;;  %s1468_s10 = smov 64   ;;  %vm55_vm0 = vcmask 261120   ;;  %vm248_vm1 = vcmask 523520   ;;  %vm441_vm2 = vcmask 785920   ;;  %vm634_vm3 = vcmask 1048320   ;;  %s2518_s1 = inlined_call_operand.vmem [shape: f32[256,32], index: 1, kind: input, shape index: {}]   ;;  %s2519_s2 = inlined_call_operand.vmem [shape: f32[256,32], index: 2, kind: input, shape index: {}]   ;;  %s2520_s3 = inlined_call_operand.vmem [shape: f32[256,32], index: 3, kind: input, shape index: {}]   ;;  %s2521_s4 = inlined_call_operand.vmem [shape: f32[128,32], index: 4, kind: input, shape index: {}]   ;;  %s2522_s0 = inlined_call_operand.vmem [shape: f32[256,32], index: 0, kind: input, shape index: {}]   ;;  %s2523_s5 = inlined_call_operand.vmem [shape: f32[1,32], index: 5, kind: input, shape index: {}]   ;;  %s2524_s6 = inlined_call_operand.vmem [shape: f32[256,32], index: 6, kind: output, shape index: {}]  }
   0x1   :  { %v89_v0 = vld [vmem:[%s2518_s1 + $0x8] sm:$0xff]  ;;  %v88_v1 = vld [vmem:[%s2518_s1] sm:$0xff]  ;;  %s1469_s19 = smov 96   ;;  %v714_v12 = vld [vmem:[%s2521_s4 + $0x78] sm:$0xff] }
   0x2   :  { %154 = vrot.lane.b32.xlu1 %v89_v0, %s1467_s25  ;;  %152 = vrot.lane.b32.xlu0 %v88_v1, %s1467_s25  ;;  %v105_v2 = vld [vmem:[%s2518_s1 + $0x88] sm:$0xff]  ;;  %v104_v3 = vld [vmem:[%s2518_s1 + $0x80] sm:$0xff] }
   0x3   :  { %v297_v4 = vld [vmem:[%s2519_s2 + $0x80] sm:$0xff]  ;;  %v298_v6 = vld [vmem:[%s2519_s2 + $0x88] sm:$0xff]  ;;  %v106_v13 = vld [vmem:[%s2518_s1 + $0x90] sm:$0xff]  ;;  %1288 = vmatprep.subr.mxu0 %v714_v12  ;;  %1368 = vmatprep.subr.mxu1 %v714_v12 }
   0x4   :  { %v281_v5 = vld [vmem:[%s2519_s2] sm:$0xff]  ;;  %v282_v7 = vld [vmem:[%s2519_s2 + $0x8] sm:$0xff]  ;;  %v713_v14 = vld [vmem:[%s2521_s4 + $0x70] sm:$0xff]  ;;  %1289 = vmatpush3.msra.mxu0 %v714_v12  ;;  %1384 = vmatpush3.msra.mxu1 %v714_v12 }
   0x5   :  { %v490_v8 = vld [vmem:[%s2520_s3 + $0x80] sm:$0xff]  ;;  %v491_v10 = vld [vmem:[%s2520_s3 + $0x88] sm:$0xff]  ;;  %v90_v15 = vld [vmem:[%s2518_s1 + $0x10] sm:$0xff]  ;;  %1290 = vmatprep.subr.mxu0 %v713_v14  ;;  %1369 = vmatprep.subr.mxu1 %v713_v14 }
   0x6   :  { %186 = vrot.lane.b32.xlu1 %v105_v2, %s1467_s25  ;;  %184 = vrot.lane.b32.xlu0 %v104_v3, %s1467_s25  ;;  %v474_v9 = vld [vmem:[%s2520_s3] sm:$0xff]  ;;  %v475_v11 = vld [vmem:[%s2520_s3 + $0x8] sm:$0xff] }
   0x7   :  { %v24_v16 = vld [vmem:[%s2522_s0 + $0x8] sm:$0xff]  ;;  %v23_v17 = vld [vmem:[%s2522_s0] sm:$0xff]  ;;  %v107_v21 = vld [vmem:[%s2518_s1 + $0x98] sm:$0xff]  ;;  %1291 = vmatpush3.msra.mxu0 %v713_v14  ;;  %1385 = vmatpush3.msra.mxu1 %v713_v14 }
   0x8   :  { %57 = vst.msk [vmem:[#allocation2 + $0x8] sm:$0xff] %vm55_vm0, %v24_v16  ;;  %56 = vst.msk [vmem:[#allocation2] sm:$0xff] %vm55_vm0, %v23_v17  ;;  %v712_v18 = vld [vmem:[%s2521_s4 + $0x68] sm:$0xff]  ;;  %v39_v20 = vld [vmem:[%s2522_s0 + $0x80] sm:$0xff] }
   0x9   :  { %v40_v19 = vld [vmem:[%s2522_s0 + $0x88] sm:$0xff]  ;;  %72 = vst.msk [vmem:[#allocation2 + $0x80] sm:$0xff] %vm55_vm0, %v39_v20  ;;  %v91_v22 = vld [vmem:[%s2518_s1 + $0x18] sm:$0xff]  ;;  %1292 = vmatprep.subr.mxu0 %v712_v18  ;;  %1370 = vmatprep.subr.mxu1 %v712_v18  ;;  %v711_v23 = vld [vmem:[%s2521_s4 + $0x60] sm:$0xff] }
   0xa   :  { %377 = vrot.lane.b32.xlu1 %v297_v4, %s1468_s10  ;;  %345 = vrot.lane.b32.xlu0 %v281_v5, %s1468_s10  ;;  %73 = vst.msk [vmem:[#allocation2 + $0x88] sm:$0xff] %vm55_vm0, %v40_v19  ;;  %v710_v24 = vld [vmem:[%s2521_s4 + $0x58] sm:$0xff]  ;;  %v299_v25 = vld [vmem:[%s2519_s2 + $0x90] sm:$0xff] }
   0xb   :  { %1293 = vmatpush3.msra.mxu0 %v712_v18  ;;  %1386 = vmatpush3.msra.mxu1 %v712_v18  ;;  %v283_v26 = vld [vmem:[%s2519_s2 + $0x10] sm:$0xff]  ;;  %v300_v30 = vld [vmem:[%s2519_s2 + $0x98] sm:$0xff]  ;;  %v708_v34 = vld [vmem:[%s2521_s4 + $0x48] sm:$0xff] }
   0xc   :  { %1294 = vmatprep.subr.mxu0 %v711_v23  ;;  %1371 = vmatprep.subr.mxu1 %v711_v23  ;;  %v709_v27 = vld [vmem:[%s2521_s4 + $0x50] sm:$0xff]  ;;  %v284_v31 = vld [vmem:[%s2519_s2 + $0x18] sm:$0xff]  ;;  %v707_v35 = vld [vmem:[%s2521_s4 + $0x40] sm:$0xff] }
   0xd   :  { %1295 = vmatpush3.msra.mxu0 %v711_v23  ;;  %1387 = vmatpush3.msra.mxu1 %v711_v23  ;;  %v41_v28 = vld [vmem:[%s2522_s0 + $0x90] sm:$0xff]  ;;  %v42_v32 = vld [vmem:[%s2522_s0 + $0x98] sm:$0xff]  ;;  %v27_v38 = vld [vmem:[%s2522_s0 + $0x20] sm:$0xff] }
   0xe   :  { %379 = vrot.lane.b32.xlu1 %v298_v6, %s1468_s10  ;;  %347 = vrot.lane.b32.xlu0 %v282_v7, %s1468_s10  ;;  %v25_v29 = vld [vmem:[%s2522_s0 + $0x10] sm:$0xff]  ;;  %74 = vst.msk [vmem:[#allocation2 + $0x90] sm:$0xff] %vm55_vm0, %v41_v28  ;;  %v26_v33 = vld [vmem:[%s2522_s0 + $0x18] sm:$0xff]  ;;  %75 = vst.msk [vmem:[#allocation2 + $0x98] sm:$0xff] %vm55_vm0, %v42_v32 }
   0xf   :  { %1296 = vmatprep.subr.mxu0 %v710_v24  ;;  %1372 = vmatprep.subr.mxu1 %v710_v24  ;;  %58 = vst.msk [vmem:[#allocation2 + $0x10] sm:$0xff] %vm55_vm0, %v25_v29  ;;  %59 = vst.msk [vmem:[#allocation2 + $0x18] sm:$0xff] %vm55_vm0, %v26_v33  ;;  %v492_v36 = vld [vmem:[%s2520_s3 + $0x90] sm:$0xff]  ;;  %v43_v39 = vld [vmem:[%s2522_s0 + $0xa0] sm:$0xff] }
  0x10   :  { %1297 = vmatpush3.msra.mxu0 %v710_v24  ;;  %1388 = vmatpush3.msra.mxu1 %v710_v24  ;;  %v476_v37 = vld [vmem:[%s2520_s3 + $0x10] sm:$0xff]  ;;  %60 = vst.msk [vmem:[#allocation2 + $0x20] sm:$0xff] %vm55_vm0, %v27_v38  ;;  %v706_v40 = vld [vmem:[%s2521_s4 + $0x38] sm:$0xff]  ;;  %76 = vst.msk [vmem:[#allocation2 + $0xa0] sm:$0xff] %vm55_vm0, %v43_v39 }
  0x11   :  { %1298 = vmatprep.subr.mxu0 %v709_v27  ;;  %1373 = vmatprep.subr.mxu1 %v709_v27  ;;  %v28_v41 = vld [vmem:[%s2522_s0 + $0x28] sm:$0xff]  ;;  %v493_v43 = vld [vmem:[%s2520_s3 + $0x98] sm:$0xff]  ;;  %v705_v45 = vld [vmem:[%s2521_s4 + $0x30] sm:$0xff] }
  0x12   :  { %570 = vrot.lane.b32.xlu1 %v490_v8, %s1469_s19  ;;  %538 = vrot.lane.b32.xlu0 %v474_v9, %s1469_s19  ;;  %v44_v42 = vld [vmem:[%s2522_s0 + $0xa8] sm:$0xff]  ;;  %61 = vst.msk [vmem:[#allocation2 + $0x28] sm:$0xff] %vm55_vm0, %v28_v41  ;;  %v477_v44 = vld [vmem:[%s2520_s3 + $0x18] sm:$0xff] }
  0x13   :  { %1299 = vmatpush3.msra.mxu0 %v709_v27  ;;  %1389 = vmatpush3.msra.mxu1 %v709_v27  ;;  %77 = vst.msk [vmem:[#allocation2 + $0xa8] sm:$0xff] %vm55_vm0, %v44_v42  ;;  %v704_v46 = vld [vmem:[%s2521_s4 + $0x28] sm:$0xff]  ;;  %v92_v47 = vld [vmem:[%s2518_s1 + $0x20] sm:$0xff]  ;;  %v702_v52 = vld [vmem:[%s2521_s4 + $0x18] sm:$0xff] }
  0x14   :  { %1300 = vmatprep.subr.mxu0 %v708_v34  ;;  %1374 = vmatprep.subr.mxu1 %v708_v34  ;;  %v108_v48 = vld [vmem:[%s2518_s1 + $0xa0] sm:$0xff]  ;;  %v93_v50 = vld [vmem:[%s2518_s1 + $0x28] sm:$0xff]  ;;  %v701_v53 = vld [vmem:[%s2521_s4 + $0x10] sm:$0xff] }
  0x15   :  { %1301 = vmatpush3.msra.mxu0 %v708_v34  ;;  %1390 = vmatpush3.msra.mxu1 %v708_v34  ;;  %v703_v49 = vld [vmem:[%s2521_s4 + $0x20] sm:$0xff]  ;;  %v109_v51 = vld [vmem:[%s2518_s1 + $0xa8] sm:$0xff]  ;;  %v29_v59 = vld [vmem:[%s2522_s0 + $0x30] sm:$0xff] }
  0x16   :  { %572 = vrot.lane.b32.xlu1 %v491_v10, %s1469_s19  ;;  %540 = vrot.lane.b32.xlu0 %v475_v11, %s1469_s19  ;;  %v285_v54 = vld [vmem:[%s2519_s2 + $0x20] sm:$0xff]  ;;  %v700_v56 = vld [vmem:[%s2521_s4 + $0x8] sm:$0xff]  ;;  %62 = vst.msk [vmem:[#allocation2 + $0x30] sm:$0xff] %vm55_vm0, %v29_v59 }
  0x17   :  { %1302 = vmatprep.subr.mxu0 %v707_v35  ;;  %1375 = vmatprep.subr.mxu1 %v707_v35  ;;  %v301_v55 = vld [vmem:[%s2519_s2 + $0xa0] sm:$0xff]  ;;  %v286_v57 = vld [vmem:[%s2519_s2 + $0x28] sm:$0xff]  ;;  %v45_v61 = vld [vmem:[%s2522_s0 + $0xb0] sm:$0xff] }
  0x18   :  { %1303 = vmatpush3.msra.mxu0 %v707_v35  ;;  %1391 = vmatpush3.msra.mxu1 %v707_v35  ;;  %v302_v58 = vld [vmem:[%s2519_s2 + $0xa8] sm:$0xff]  ;;  %v699_v60 = vld [vmem:[%s2521_s4] sm:$0xff]  ;;  %78 = vst.msk [vmem:[#allocation2 + $0xb0] sm:$0xff] %vm55_vm0, %v45_v61  ;;  %v30_v0 = vld [vmem:[%s2522_s0 + $0x38] sm:$0xff] }
  0x19   :  { %1304 = vmatprep.subr.mxu0 %v706_v40  ;;  %1376 = vmatprep.subr.mxu1 %v706_v40  ;;  %v478_v62 = vld [vmem:[%s2520_s3 + $0x20] sm:$0xff]  ;;  %63 = vst.msk [vmem:[#allocation2 + $0x38] sm:$0xff] %vm55_vm0, %v30_v0  ;;  %v46_v1 = vld [vmem:[%s2522_s0 + $0xb8] sm:$0xff]  ;;  %v479_v2 = vld [vmem:[%s2520_s3 + $0x28] sm:$0xff] }
  0x1a   :  { %188 = vrot.lane.b32.xlu1 %v106_v13, %s1467_s25  ;;  %156 = vrot.lane.b32.xlu0 %v90_v15, %s1467_s25  ;;  %v494_v63 = vld [vmem:[%s2520_s3 + $0xa0] sm:$0xff]  ;;  %79 = vst.msk [vmem:[#allocation2 + $0xb8] sm:$0xff] %vm55_vm0, %v46_v1  ;;  %v495_v3 = vld [vmem:[%s2520_s3 + $0xa8] sm:$0xff] }
  0x1b   :  { %1305 = vmatpush3.msra.mxu0 %v706_v40  ;;  %1392 = vmatpush3.msra.mxu1 %v706_v40  ;;  %v94_v4 = vld [vmem:[%s2518_s1 + $0x30] sm:$0xff]  ;;  %v95_v6 = vld [vmem:[%s2518_s1 + $0x38] sm:$0xff]  ;;  %v31_v12 = vld [vmem:[%s2522_s0 + $0x40] sm:$0xff] }
  0x1c   :  { %1306 = vmatprep.subr.mxu0 %v705_v45  ;;  %1377 = vmatprep.subr.mxu1 %v705_v45  ;;  %v110_v5 = vld [vmem:[%s2518_s1 + $0xb0] sm:$0xff]  ;;  %v111_v7 = vld [vmem:[%s2518_s1 + $0xb8] sm:$0xff]  ;;  %64 = vst.msk [vmem:[#allocation2 + $0x40] sm:$0xff] %vm55_vm0, %v31_v12  ;;  %v47_v13 = vld [vmem:[%s2522_s0 + $0xc0] sm:$0xff] }
  0x1d   :  { %1307 = vmatpush3.msra.mxu0 %v705_v45  ;;  %1393 = vmatpush3.msra.mxu1 %v705_v45  ;;  %v287_v8 = vld [vmem:[%s2519_s2 + $0x30] sm:$0xff]  ;;  %v288_v10 = vld [vmem:[%s2519_s2 + $0x38] sm:$0xff]  ;;  %80 = vst.msk [vmem:[#allocation2 + $0xc0] sm:$0xff] %vm55_vm0, %v47_v13  ;;  %v32_v16 = vld [vmem:[%s2522_s0 + $0x48] sm:$0xff] }
  0x1e   :  { %190 = vrot.lane.b32.xlu1 %v107_v21, %s1467_s25  ;;  %158 = vrot.lane.b32.xlu0 %v91_v22, %s1467_s25  ;;  %v303_v9 = vld [vmem:[%s2519_s2 + $0xb0] sm:$0xff]  ;;  %v304_v11 = vld [vmem:[%s2519_s2 + $0xb8] sm:$0xff]  ;;  %65 = vst.msk [vmem:[#allocation2 + $0x48] sm:$0xff] %vm55_vm0, %v32_v16 }
  0x1f   :  { %1308 = vmatprep.subr.mxu0 %v704_v46  ;;  %1378 = vmatprep.subr.mxu1 %v704_v46  ;;  %v480_v14 = vld [vmem:[%s2520_s3 + $0x30] sm:$0xff]  ;;  %v48_v17 = vld [vmem:[%s2522_s0 + $0xc8] sm:$0xff]  ;;  %v481_v18 = vld [vmem:[%s2520_s3 + $0x38] sm:$0xff] }
  0x20   :  { %1309 = vmatpush3.msra.mxu0 %v704_v46  ;;  %1394 = vmatpush3.msra.mxu1 %v704_v46  ;;  %v496_v15 = vld [vmem:[%s2520_s3 + $0xb0] sm:$0xff]  ;;  %81 = vst.msk [vmem:[#allocation2 + $0xc8] sm:$0xff] %vm55_vm0, %v48_v17  ;;  %v497_v19 = vld [vmem:[%s2520_s3 + $0xb8] sm:$0xff]  ;;  %v96_v20 = vld [vmem:[%s2518_s1 + $0x40] sm:$0xff] }
  0x21   :  { %1310 = vmatprep.subr.mxu0 %v703_v49  ;;  %1379 = vmatprep.subr.mxu1 %v703_v49  ;;  %v112_v21 = vld [vmem:[%s2518_s1 + $0xc0] sm:$0xff]  ;;  %v97_v22 = vld [vmem:[%s2518_s1 + $0x48] sm:$0xff]  ;;  %v33_v28 = vld [vmem:[%s2522_s0 + $0x50] sm:$0xff] }
  0x22   :  { %381 = vrot.lane.b32.xlu1 %v299_v25, %s1468_s10  ;;  %349 = vrot.lane.b32.xlu0 %v283_v26, %s1468_s10  ;;  %v113_v23 = vld [vmem:[%s2518_s1 + $0xc8] sm:$0xff]  ;;  %v289_v24 = vld [vmem:[%s2519_s2 + $0x40] sm:$0xff]  ;;  %66 = vst.msk [vmem:[#allocation2 + $0x50] sm:$0xff] %vm55_vm0, %v33_v28 }
  0x23   :  { %1311 = vmatpush3.msra.mxu0 %v703_v49  ;;  %1395 = vmatpush3.msra.mxu1 %v703_v49  ;;  %v305_v25 = vld [vmem:[%s2519_s2 + $0xc0] sm:$0xff]  ;;  %v290_v26 = vld [vmem:[%s2519_s2 + $0x48] sm:$0xff]  ;;  %v49_v29 = vld [vmem:[%s2522_s0 + $0xd0] sm:$0xff] }
  0x24   :  { %1312 = vmatprep.subr.mxu0 %v702_v52  ;;  %1380 = vmatprep.subr.mxu1 %v702_v52  ;;  %v306_v27 = vld [vmem:[%s2519_s2 + $0xc8] sm:$0xff]  ;;  %82 = vst.msk [vmem:[#allocation2 + $0xd0] sm:$0xff] %vm55_vm0, %v49_v29  ;;  %v34_v32 = vld [vmem:[%s2522_s0 + $0x58] sm:$0xff]  ;;  %v98_v38 = vld [vmem:[%s2518_s1 + $0x50] sm:$0xff] }
  0x25   :  { %1313 = vmatpush3.msra.mxu0 %v702_v52  ;;  %1396 = vmatpush3.msra.mxu1 %v702_v52  ;;  %67 = vst.msk [vmem:[#allocation2 + $0x58] sm:$0xff] %vm55_vm0, %v34_v32  ;;  %v50_v33 = vld [vmem:[%s2522_s0 + $0xd8] sm:$0xff]  ;;  %v483_v34 = vld [vmem:[%s2520_s3 + $0x48] sm:$0xff]  ;;  %v114_v39 = vld [vmem:[%s2518_s1 + $0xd0] sm:$0xff] }
  0x26   :  { %383 = vrot.lane.b32.xlu1 %v300_v30, %s1468_s10  ;;  %351 = vrot.lane.b32.xlu0 %v284_v31, %s1468_s10  ;;  %v482_v30 = vld [vmem:[%s2520_s3 + $0x40] sm:$0xff]  ;;  %83 = vst.msk [vmem:[#allocation2 + $0xd8] sm:$0xff] %vm55_vm0, %v50_v33  ;;  %v499_v35 = vld [vmem:[%s2520_s3 + $0xc8] sm:$0xff] }
  0x27   :  { %1314 = vmatprep.subr.mxu0 %v701_v53  ;;  %1381 = vmatprep.subr.mxu1 %v701_v53  ;;  %v498_v31 = vld [vmem:[%s2520_s3 + $0xc0] sm:$0xff]  ;;  %v99_v42 = vld [vmem:[%s2518_s1 + $0x58] sm:$0xff]  ;;  %v291_v46 = vld [vmem:[%s2519_s2 + $0x50] sm:$0xff] }
  0x28   :  { %1315 = vmatpush3.msra.mxu0 %v701_v53  ;;  %1397 = vmatpush3.msra.mxu1 %v701_v53  ;;  %v35_v52 = vld [vmem:[%s2522_s0 + $0x60] sm:$0xff]  ;;  %v52_v61 = vld [vmem:[%s2522_s0 + $0xe8] sm:$0xff]  ;;  %v54_v29 = vld [vmem:[%s2522_s0 + $0xf8] sm:$0xff] }
  0x29   :  { %1316 = vmatprep.subr.mxu0 %v700_v56  ;;  %1382 = vmatprep.subr.mxu1 %v700_v56  ;;  %68 = vst.msk [vmem:[#allocation2 + $0x60] sm:$0xff] %vm55_vm0, %v35_v52  ;;  %85 = vst.msk [vmem:[#allocation2 + $0xe8] sm:$0xff] %vm55_vm0, %v52_v61 }
  0x2a   :  { %574 = vrot.lane.b32.xlu1 %v492_v36, %s1469_s19  ;;  %542 = vrot.lane.b32.xlu0 %v476_v37, %s1469_s19  ;;  %87 = vst.msk [vmem:[#allocation2 + $0xf8] sm:$0xff] %vm55_vm0, %v54_v29 }
  0x2b   :  { %1317 = vmatpush3.msra.mxu0 %v700_v56  ;;  %1398 = vmatpush3.msra.mxu1 %v700_v56  ;;  %v484_v56 = vld [vmem:[%s2520_s3 + $0x50] sm:$0xff] }
  0x2c   :  { %1318 = vmatprep.subr.mxu0 %v699_v60  ;;  %1383 = vmatprep.subr.mxu1 %v699_v60 }
  0x2d   :  { %1319 = vmatpush3.msra.mxu0 %v699_v60  ;;  %1399 = vmatpush3.msra.mxu1 %v699_v60 }
  0x2e   :  { %576 = vrot.lane.b32.xlu1 %v493_v43, %s1469_s19  ;;  %544 = vrot.lane.b32.xlu0 %v477_v44, %s1469_s19  ;;  %v115_v43 = vld [vmem:[%s2518_s1 + $0xd8] sm:$0xff] }
  0x32   :  { %160 = vrot.lane.b32.xlu0 %v92_v47, %s1467_s25  ;;  %192 = vrot.lane.b32.xlu1 %v108_v48, %s1467_s25  ;;  %v307_v47 = vld [vmem:[%s2519_s2 + $0xd0] sm:$0xff] }
  0x36   :  { %162 = vrot.lane.b32.xlu0 %v93_v50, %s1467_s25  ;;  %194 = vrot.lane.b32.xlu1 %v109_v51, %s1467_s25  ;;  %v292_v50 = vld [vmem:[%s2519_s2 + $0x58] sm:$0xff] }
  0x37   :  { %v308_v51 = vld [vmem:[%s2519_s2 + $0xd8] sm:$0xff] }
  0x3a   :  { %353 = vrot.lane.b32.xlu0 %v285_v54, %s1468_s10  ;;  %385 = vrot.lane.b32.xlu1 %v301_v55, %s1468_s10  ;;  %v51_v55 = vld [vmem:[%s2522_s0 + $0xe0] sm:$0xff] }
  0x3b   :  { %84 = vst.msk [vmem:[#allocation2 + $0xe0] sm:$0xff] %vm55_vm0, %v51_v55  ;;  %v504_v55 = vld [vmem:[%s2520_s3 + $0xf0] sm:$0xff] }
  0x3e   :  { %355 = vrot.lane.b32.xlu0 %v286_v57, %s1468_s10  ;;  %387 = vrot.lane.b32.xlu1 %v302_v58, %s1468_s10  ;;  %v500_v57 = vld [vmem:[%s2520_s3 + $0xd0] sm:$0xff]  ;;  %v36_v58 = vld [vmem:[%s2522_s0 + $0x68] sm:$0xff] }
  0x3f   :  { %69 = vst.msk [vmem:[#allocation2 + $0x68] sm:$0xff] %vm55_vm0, %v36_v58  ;;  %v489_v58 = vld [vmem:[%s2520_s3 + $0x78] sm:$0xff] }
  0x42   :  { %546 = vrot.lane.b32.xlu0 %v478_v62, %s1469_s19  ;;  %578 = vrot.lane.b32.xlu1 %v494_v63, %s1469_s19  ;;  %v485_v62 = vld [vmem:[%s2520_s3 + $0x58] sm:$0xff] }
  0x43   :  { %v501_v63 = vld [vmem:[%s2520_s3 + $0xd8] sm:$0xff] }
  0x46   :  { %548 = vrot.lane.b32.xlu0 %v479_v2, %s1469_s19  ;;  %580 = vrot.lane.b32.xlu1 %v495_v3, %s1469_s19 }
  0x4a   :  { %164 = vrot.lane.b32.xlu0 %v94_v4, %s1467_s25  ;;  %196 = vrot.lane.b32.xlu1 %v110_v5, %s1467_s25  ;;  %v100_v4 = vld [vmem:[%s2518_s1 + $0x60] sm:$0xff] }
  0x4b   :  { %v116_v5 = vld [vmem:[%s2518_s1 + $0xe0] sm:$0xff] }
  0x4e   :  { %166 = vrot.lane.b32.xlu0 %v95_v6, %s1467_s25  ;;  %198 = vrot.lane.b32.xlu1 %v111_v7, %s1467_s25 }
  0x52   :  { %357 = vrot.lane.b32.xlu0 %v287_v8, %s1468_s10  ;;  %389 = vrot.lane.b32.xlu1 %v303_v9, %s1468_s10 }
  0x56   :  { %359 = vrot.lane.b32.xlu0 %v288_v10, %s1468_s10  ;;  %391 = vrot.lane.b32.xlu1 %v304_v11, %s1468_s10  ;;  %v101_v10 = vld [vmem:[%s2518_s1 + $0x68] sm:$0xff] }
  0x57   :  { %v117_v11 = vld [vmem:[%s2518_s1 + $0xe8] sm:$0xff] }
  0x5a   :  { %550 = vrot.lane.b32.xlu0 %v480_v14, %s1469_s19  ;;  %582 = vrot.lane.b32.xlu1 %v496_v15, %s1469_s19  ;;  %v293_v14 = vld [vmem:[%s2519_s2 + $0x60] sm:$0xff] }
  0x5b   :  { %v309_v15 = vld [vmem:[%s2519_s2 + $0xe0] sm:$0xff] }
  0x5e   :  { %552 = vrot.lane.b32.xlu0 %v481_v18, %s1469_s19  ;;  %584 = vrot.lane.b32.xlu1 %v497_v19, %s1469_s19  ;;  %v294_v18 = vld [vmem:[%s2519_s2 + $0x68] sm:$0xff] }
  0x5f   :  { %v310_v19 = vld [vmem:[%s2519_s2 + $0xe8] sm:$0xff] }
  0x62   :  { %168 = vrot.lane.b32.xlu0 %v96_v20, %s1467_s25  ;;  %200 = vrot.lane.b32.xlu1 %v112_v21, %s1467_s25  ;;  %v37_v20 = vld [vmem:[%s2522_s0 + $0x70] sm:$0xff] }
  0x63   :  { %70 = vst.msk [vmem:[#allocation2 + $0x70] sm:$0xff] %vm55_vm0, %v37_v20 }
  0x66   :  { %170 = vrot.lane.b32.xlu0 %v97_v22, %s1467_s25  ;;  %202 = vrot.lane.b32.xlu1 %v113_v23, %s1467_s25  ;;  %v53_v23 = vld [vmem:[%s2522_s0 + $0xf0] sm:$0xff] }
  0x67   :  { %86 = vst.msk [vmem:[#allocation2 + $0xf0] sm:$0xff] %vm55_vm0, %v53_v23 }
  0x6a   :  { %361 = vrot.lane.b32.xlu0 %v289_v24, %s1468_s10  ;;  %393 = vrot.lane.b32.xlu1 %v305_v25, %s1468_s10  ;;  %v486_v24 = vld [vmem:[%s2520_s3 + $0x60] sm:$0xff] }
  0x6b   :  { %v502_v25 = vld [vmem:[%s2520_s3 + $0xe0] sm:$0xff] }
  0x6e   :  { %363 = vrot.lane.b32.xlu0 %v290_v26, %s1468_s10  ;;  %395 = vrot.lane.b32.xlu1 %v306_v27, %s1468_s10  ;;  %v38_v26 = vld [vmem:[%s2522_s0 + $0x78] sm:$0xff] }
  0x6f   :  { %71 = vst.msk [vmem:[#allocation2 + $0x78] sm:$0xff] %vm55_vm0, %v38_v26 }
  0x72   :  { %554 = vrot.lane.b32.xlu0 %v482_v30, %s1469_s19  ;;  %586 = vrot.lane.b32.xlu1 %v498_v31, %s1469_s19  ;;  %v487_v30 = vld [vmem:[%s2520_s3 + $0x68] sm:$0xff] }
  0x73   :  { %v503_v31 = vld [vmem:[%s2520_s3 + $0xe8] sm:$0xff] }
  0x74   :  { %v155_v36 = vpop.permute.xlu1 %154  ;;  %v153_v37 = vpop.permute.xlu0 %152 }
  0x75   :  { %250 = vst.msk [vmem:[#allocation2 + $0x8] sm:$0xff] %vm248_vm1, %v155_v36  ;;  %249 = vst.msk [vmem:[#allocation2] sm:$0xff] %vm248_vm1, %v153_v37  ;;  %v102_v36 = vld [vmem:[%s2518_s1 + $0x70] sm:$0xff] }
  0x76   :  { %556 = vrot.lane.b32.xlu0 %v483_v34, %s1469_s19  ;;  %588 = vrot.lane.b32.xlu1 %v499_v35, %s1469_s19  ;;  %v118_v37 = vld [vmem:[%s2518_s1 + $0xf0] sm:$0xff] }
  0x78   :  { %v187_v40 = vpop.permute.xlu1 %186  ;;  %v185_v41 = vpop.permute.xlu0 %184 }
  0x79   :  { %266 = vst.msk [vmem:[#allocation2 + $0x88] sm:$0xff] %vm248_vm1, %v187_v40  ;;  %265 = vst.msk [vmem:[#allocation2 + $0x80] sm:$0xff] %vm248_vm1, %v185_v41 }
  0x7a   :  { %172 = vrot.lane.b32.xlu0 %v98_v38, %s1467_s25  ;;  %204 = vrot.lane.b32.xlu1 %v114_v39, %s1467_s25 }
  0x7c   :  { %v378_v44 = vpop.permute.xlu1 %377  ;;  %v346_v45 = vpop.permute.xlu0 %345 }
  0x7d   :  { %458 = vst.msk [vmem:[#allocation2 + $0x80] sm:$0xff] %vm441_vm2, %v378_v44  ;;  %442 = vst.msk [vmem:[#allocation2] sm:$0xff] %vm441_vm2, %v346_v45 }
  0x7e   :  { %174 = vrot.lane.b32.xlu0 %v99_v42, %s1467_s25  ;;  %206 = vrot.lane.b32.xlu1 %v115_v43, %s1467_s25  ;;  %v103_v42 = vld [vmem:[%s2518_s1 + $0x78] sm:$0xff] }
  0x7f   :  { %v119_v43 = vld [vmem:[%s2518_s1 + $0xf8] sm:$0xff] }
  0x80   :  { %v380_v48 = vpop.permute.xlu1 %379  ;;  %v348_v49 = vpop.permute.xlu0 %347 }
  0x81   :  { %459 = vst.msk [vmem:[#allocation2 + $0x88] sm:$0xff] %vm441_vm2, %v380_v48  ;;  %443 = vst.msk [vmem:[#allocation2 + $0x8] sm:$0xff] %vm441_vm2, %v348_v49 }
  0x82   :  { %365 = vrot.lane.b32.xlu0 %v291_v46, %s1468_s10  ;;  %397 = vrot.lane.b32.xlu1 %v307_v47, %s1468_s10  ;;  %v295_v46 = vld [vmem:[%s2519_s2 + $0x70] sm:$0xff] }
  0x83   :  { %v311_v47 = vld [vmem:[%s2519_s2 + $0xf0] sm:$0xff] }
  0x84   :  { %v571_v53 = vpop.permute.xlu1 %570  ;;  %v539_v54 = vpop.permute.xlu0 %538 }
  0x85   :  { %651 = vst.msk [vmem:[#allocation2 + $0x80] sm:$0xff] %vm634_vm3, %v571_v53  ;;  %635 = vst.msk [vmem:[#allocation2] sm:$0xff] %vm634_vm3, %v539_v54  ;;  %v488_v54 = vld [vmem:[%s2520_s3 + $0x70] sm:$0xff] }
  0x86   :  { %367 = vrot.lane.b32.xlu0 %v292_v50, %s1468_s10  ;;  %399 = vrot.lane.b32.xlu1 %v308_v51, %s1468_s10  ;;  %v296_v50 = vld [vmem:[%s2519_s2 + $0x78] sm:$0xff] }
  0x87   :  { %v312_v51 = vld [vmem:[%s2519_s2 + $0xf8] sm:$0xff] }
  0x88   :  { %v573_v59 = vpop.permute.xlu1 %572  ;;  %v541_v60 = vpop.permute.xlu0 %540 }
  0x89   :  { %652 = vst.msk [vmem:[#allocation2 + $0x88] sm:$0xff] %vm634_vm3, %v573_v59  ;;  %636 = vst.msk [vmem:[#allocation2 + $0x8] sm:$0xff] %vm634_vm3, %v541_v60  ;;  %v505_v59 = vld [vmem:[%s2520_s3 + $0xf8] sm:$0xff] }
  0x8a   :  { %558 = vrot.lane.b32.xlu0 %v484_v56, %s1469_s19  ;;  %590 = vrot.lane.b32.xlu1 %v500_v57, %s1469_s19 }
  0x8c   :  { %v189_v0 = vpop.permute.xlu1 %188  ;;  %v157_v1 = vpop.permute.xlu0 %156  ;;  %v667_v2 = vld [vmem:[#allocation2] sm:$0xff] }
  0x8d   :  { %v683_v3 = vld [vmem:[#allocation2 + $0x80] sm:$0xff]  ;;  %267 = vst.msk [vmem:[#allocation2 + $0x90] sm:$0xff] %vm248_vm1, %v189_v0  ;;  %251 = vst.msk [vmem:[#allocation2 + $0x10] sm:$0xff] %vm248_vm1, %v157_v1  ;;  %1320 = vmatprep.mubr.f32.mxu0 %v667_v2 }
  0x8e   :  { %1344 = vmatprep.mubr.f32.mxu1 %v683_v3  ;;  %560 = vrot.lane.b32.xlu0 %v485_v62, %s1469_s19 }
  0x8f   :  { %592 = vrot.lane.b32.xlu1 %v501_v63, %s1469_s19 }
  0x90   :  { %v191_v6 = vpop.permute.xlu1 %190  ;;  %v159_v7 = vpop.permute.xlu0 %158  ;;  %v668_v8 = vld [vmem:[#allocation2 + $0x8] sm:$0xff] }
  0x91   :  { %v684_v9 = vld [vmem:[#allocation2 + $0x88] sm:$0xff]  ;;  %268 = vst.msk [vmem:[#allocation2 + $0x98] sm:$0xff] %vm248_vm1, %v191_v6  ;;  %252 = vst.msk [vmem:[#allocation2 + $0x18] sm:$0xff] %vm248_vm1, %v159_v7  ;;  %1321 = vmatmul.mubr.f32.vlgmr.msra.gmra.mxu0 %v668_v8 }
  0x92   :  { %1345 = vmatmul.mubr.f32.vlgmr.msra.gmra.mxu1 %v684_v9  ;;  %176 = vrot.lane.b32.xlu0 %v100_v4, %s1467_s25 }
  0x93   :  { %208 = vrot.lane.b32.xlu1 %v116_v5, %s1467_s25 }
  0x94   :  { %v382_v12 = vpop.permute.xlu1 %381  ;;  %v350_v13 = vpop.permute.xlu0 %349 }
  0x95   :  { %460 = vst.msk [vmem:[#allocation2 + $0x90] sm:$0xff] %vm441_vm2, %v382_v12  ;;  %444 = vst.msk [vmem:[#allocation2 + $0x10] sm:$0xff] %vm441_vm2, %v350_v13 }
  0x96   :  { %178 = vrot.lane.b32.xlu0 %v101_v10, %s1467_s25 }
  0x97   :  { %210 = vrot.lane.b32.xlu1 %v117_v11, %s1467_s25 }
  0x98   :  { %v384_v16 = vpop.permute.xlu1 %383  ;;  %v352_v17 = vpop.permute.xlu0 %351 }
  0x99   :  { %461 = vst.msk [vmem:[#allocation2 + $0x98] sm:$0xff] %vm441_vm2, %v384_v16  ;;  %445 = vst.msk [vmem:[#allocation2 + $0x18] sm:$0xff] %vm441_vm2, %v352_v17 }
  0x9a   :  { %369 = vrot.lane.b32.xlu0 %v293_v14, %s1468_s10 }
  0x9b   :  { %401 = vrot.lane.b32.xlu1 %v309_v15, %s1468_s10 }
  0x9c   :  { %v575_v21 = vpop.permute.xlu1 %574  ;;  %v543_v22 = vpop.permute.xlu0 %542 }
  0x9d   :  { %653 = vst.msk [vmem:[#allocation2 + $0x90] sm:$0xff] %vm634_vm3, %v575_v21  ;;  %637 = vst.msk [vmem:[#allocation2 + $0x10] sm:$0xff] %vm634_vm3, %v543_v22 }
  0x9e   :  { %371 = vrot.lane.b32.xlu0 %v294_v18, %s1468_s10 }
  0x9f   :  { %403 = vrot.lane.b32.xlu1 %v310_v19, %s1468_s10 }
  0xa0   :  { %v577_v27 = vpop.permute.xlu1 %576  ;;  %v545_v28 = vpop.permute.xlu0 %544 }
  0xa1   :  { %654 = vst.msk [vmem:[#allocation2 + $0x98] sm:$0xff] %vm634_vm3, %v577_v27  ;;  %638 = vst.msk [vmem:[#allocation2 + $0x18] sm:$0xff] %vm634_vm3, %v545_v28 }
  0xa2   :  { %562 = vrot.lane.b32.xlu0 %v486_v24, %s1469_s19 }
  0xa3   :  { %594 = vrot.lane.b32.xlu1 %v502_v25, %s1469_s19 }
  0xa4   :  { %v161_v32 = vpop.permute.xlu0 %160  ;;  %v669_v33 = vld [vmem:[#allocation2 + $0x10] sm:$0xff]  ;;  %v193_v34 = vpop.permute.xlu1 %192 }
  0xa5   :  { %v685_v35 = vld [vmem:[#allocation2 + $0x90] sm:$0xff]  ;;  %253 = vst.msk [vmem:[#allocation2 + $0x20] sm:$0xff] %vm248_vm1, %v161_v32  ;;  %1323 = vmatprep.mubr.f32.mxu0 %v669_v33  ;;  %269 = vst.msk [vmem:[#allocation2 + $0xa0] sm:$0xff] %vm248_vm1, %v193_v34 }
  0xa6   :  { %1347 = vmatprep.mubr.f32.mxu1 %v685_v35  ;;  %564 = vrot.lane.b32.xlu0 %v487_v30, %s1469_s19 }
  0xa7   :  { %596 = vrot.lane.b32.xlu1 %v503_v31, %s1469_s19 }
  0xa8   :  { %v163_v38 = vpop.permute.xlu0 %162  ;;  %v670_v39 = vld [vmem:[#allocation2 + $0x18] sm:$0xff]  ;;  %v195_v41 = vpop.permute.xlu1 %194 }
  0xa9   :  { %v686_v40 = vld [vmem:[#allocation2 + $0x98] sm:$0xff]  ;;  %254 = vst.msk [vmem:[#allocation2 + $0x28] sm:$0xff] %vm248_vm1, %v163_v38  ;;  %1324 = vmatmul.mubr.f32.gmra.mxu0 %v670_v39  ;;  %270 = vst.msk [vmem:[#allocation2 + $0xa8] sm:$0xff] %vm248_vm1, %v195_v41 }
  0xaa   :  { %1348 = vmatmul.mubr.f32.gmra.mxu1 %v686_v40  ;;  %180 = vrot.lane.b32.xlu0 %v102_v36, %s1467_s25 }
  0xab   :  { %212 = vrot.lane.b32.xlu1 %v118_v37, %s1467_s25 }
  0xac   :  { %v354_v44 = vpop.permute.xlu0 %353  ;;  %v386_v45 = vpop.permute.xlu1 %385 }
  0xad   :  { %446 = vst.msk [vmem:[#allocation2 + $0x20] sm:$0xff] %vm441_vm2, %v354_v44  ;;  %462 = vst.msk [vmem:[#allocation2 + $0xa0] sm:$0xff] %vm441_vm2, %v386_v45 }
  0xae   :  { %182 = vrot.lane.b32.xlu0 %v103_v42, %s1467_s25 }
  0xaf   :  { %214 = vrot.lane.b32.xlu1 %v119_v43, %s1467_s25 }
  0xb0   :  { %v356_v48 = vpop.permute.xlu0 %355  ;;  %v388_v49 = vpop.permute.xlu1 %387 }
  0xb1   :  { %447 = vst.msk [vmem:[#allocation2 + $0x28] sm:$0xff] %vm441_vm2, %v356_v48  ;;  %463 = vst.msk [vmem:[#allocation2 + $0xa8] sm:$0xff] %vm441_vm2, %v388_v49 }
  0xb2   :  { %373 = vrot.lane.b32.xlu0 %v295_v46, %s1468_s10 }
  0xb3   :  { %405 = vrot.lane.b32.xlu1 %v311_v47, %s1468_s10 }
  0xb4   :  { %v547_v52 = vpop.permute.xlu0 %546  ;;  %v579_v53 = vpop.permute.xlu1 %578 }
  0xb5   :  { %639 = vst.msk [vmem:[#allocation2 + $0x20] sm:$0xff] %vm634_vm3, %v547_v52  ;;  %655 = vst.msk [vmem:[#allocation2 + $0xa0] sm:$0xff] %vm634_vm3, %v579_v53 }
  0xb6   :  { %375 = vrot.lane.b32.xlu0 %v296_v50, %s1468_s10 }
  0xb7   :  { %407 = vrot.lane.b32.xlu1 %v312_v51, %s1468_s10 }
  0xb8   :  { %v549_v56 = vpop.permute.xlu0 %548  ;;  %v581_v57 = vpop.permute.xlu1 %580 }
  0xb9   :  { %640 = vst.msk [vmem:[#allocation2 + $0x28] sm:$0xff] %vm634_vm3, %v549_v56  ;;  %656 = vst.msk [vmem:[#allocation2 + $0xa8] sm:$0xff] %vm634_vm3, %v581_v57 }
  0xba   :  { %566 = vrot.lane.b32.xlu0 %v488_v54, %s1469_s19 }
  0xbb   :  { %598 = vrot.lane.b32.xlu1 %v504_v55, %s1469_s19 }
  0xbc   :  { %v165_v60 = vpop.permute.xlu0 %164  ;;  %v671_v61 = vld [vmem:[#allocation2 + $0x20] sm:$0xff]  ;;  %v197_v62 = vpop.permute.xlu1 %196 }
  0xbd   :  { %v687_v63 = vld [vmem:[#allocation2 + $0xa0] sm:$0xff]  ;;  %255 = vst.msk [vmem:[#allocation2 + $0x30] sm:$0xff] %vm248_vm1, %v165_v60  ;;  %1326 = vmatprep.mubr.f32.mxu0 %v671_v61  ;;  %271 = vst.msk [vmem:[#allocation2 + $0xb0] sm:$0xff] %vm248_vm1, %v197_v62 }
  0xbe   :  { %1350 = vmatprep.mubr.f32.mxu1 %v687_v63  ;;  %568 = vrot.lane.b32.xlu0 %v489_v58, %s1469_s19 }
  0xbf   :  { %600 = vrot.lane.b32.xlu1 %v505_v59, %s1469_s19 }
  0xc0   :  { %v167_v0 = vpop.permute.xlu0 %166  ;;  %v672_v1 = vld [vmem:[#allocation2 + $0x28] sm:$0xff]  ;;  %v199_v2 = vpop.permute.xlu1 %198 }
  0xc1   :  { %v688_v3 = vld [vmem:[#allocation2 + $0xa8] sm:$0xff]  ;;  %256 = vst.msk [vmem:[#allocation2 + $0x38] sm:$0xff] %vm248_vm1, %v167_v0  ;;  %1327 = vmatmul.mubr.f32.gmra.mxu0 %v672_v1  ;;  %272 = vst.msk [vmem:[#allocation2 + $0xb8] sm:$0xff] %vm248_vm1, %v199_v2 }
  0xc2   :  { %1351 = vmatmul.mubr.f32.gmra.mxu1 %v688_v3 }
  0xc4   :  { %v358_v4 = vpop.permute.xlu0 %357  ;;  %v390_v5 = vpop.permute.xlu1 %389 }
  0xc5   :  { %448 = vst.msk [vmem:[#allocation2 + $0x30] sm:$0xff] %vm441_vm2, %v358_v4  ;;  %464 = vst.msk [vmem:[#allocation2 + $0xb0] sm:$0xff] %vm441_vm2, %v390_v5 }
  0xc8   :  { %v360_v6 = vpop.permute.xlu0 %359  ;;  %v392_v7 = vpop.permute.xlu1 %391 }
  0xc9   :  { %449 = vst.msk [vmem:[#allocation2 + $0x38] sm:$0xff] %vm441_vm2, %v360_v6  ;;  %465 = vst.msk [vmem:[#allocation2 + $0xb8] sm:$0xff] %vm441_vm2, %v392_v7 }
  0xcc   :  { %v551_v8 = vpop.permute.xlu0 %550  ;;  %v583_v9 = vpop.permute.xlu1 %582 }
  0xcd   :  { %641 = vst.msk [vmem:[#allocation2 + $0x30] sm:$0xff] %vm634_vm3, %v551_v8  ;;  %657 = vst.msk [vmem:[#allocation2 + $0xb0] sm:$0xff] %vm634_vm3, %v583_v9 }
  0xd0   :  { %v553_v10 = vpop.permute.xlu0 %552  ;;  %v585_v11 = vpop.permute.xlu1 %584 }
  0xd1   :  { %642 = vst.msk [vmem:[#allocation2 + $0x38] sm:$0xff] %vm634_vm3, %v553_v10  ;;  %658 = vst.msk [vmem:[#allocation2 + $0xb8] sm:$0xff] %vm634_vm3, %v585_v11 }
  0xd4   :  { %v169_v12 = vpop.permute.xlu0 %168  ;;  %v673_v13 = vld [vmem:[#allocation2 + $0x30] sm:$0xff]  ;;  %v201_v14 = vpop.permute.xlu1 %200 }
  0xd5   :  { %v689_v15 = vld [vmem:[#allocation2 + $0xb0] sm:$0xff]  ;;  %257 = vst.msk [vmem:[#allocation2 + $0x40] sm:$0xff] %vm248_vm1, %v169_v12  ;;  %1329 = vmatprep.mubr.f32.mxu0 %v673_v13  ;;  %273 = vst.msk [vmem:[#allocation2 + $0xc0] sm:$0xff] %vm248_vm1, %v201_v14 }
  0xd6   :  { %1353 = vmatprep.mubr.f32.mxu1 %v689_v15 }
  0xd8   :  { %v171_v16 = vpop.permute.xlu0 %170  ;;  %v674_v17 = vld [vmem:[#allocation2 + $0x38] sm:$0xff]  ;;  %v203_v18 = vpop.permute.xlu1 %202 }
  0xd9   :  { %v690_v19 = vld [vmem:[#allocation2 + $0xb8] sm:$0xff]  ;;  %258 = vst.msk [vmem:[#allocation2 + $0x48] sm:$0xff] %vm248_vm1, %v171_v16  ;;  %1330 = vmatmul.mubr.f32.gmra.mxu0 %v674_v17  ;;  %274 = vst.msk [vmem:[#allocation2 + $0xc8] sm:$0xff] %vm248_vm1, %v203_v18  ;;  %v2164_v16 = vld [vmem:[%s2523_s5] ss:$0 sm:$0xff] }
  0xda   :  { %1354 = vmatmul.mubr.f32.gmra.mxu1 %v690_v19 }
  0xdc   :  { %v362_v20 = vpop.permute.xlu0 %361  ;;  %v394_v21 = vpop.permute.xlu1 %393 }
  0xdd   :  { %450 = vst.msk [vmem:[#allocation2 + $0x40] sm:$0xff] %vm441_vm2, %v362_v20  ;;  %466 = vst.msk [vmem:[#allocation2 + $0xc0] sm:$0xff] %vm441_vm2, %v394_v21 }
  0xe0   :  { %v364_v22 = vpop.permute.xlu0 %363  ;;  %v396_v23 = vpop.permute.xlu1 %395 }
  0xe1   :  { %451 = vst.msk [vmem:[#allocation2 + $0x48] sm:$0xff] %vm441_vm2, %v364_v22  ;;  %467 = vst.msk [vmem:[#allocation2 + $0xc8] sm:$0xff] %vm441_vm2, %v396_v23 }
  0xe4   :  { %v555_v24 = vpop.permute.xlu0 %554  ;;  %v587_v25 = vpop.permute.xlu1 %586 }
  0xe5   :  { %643 = vst.msk [vmem:[#allocation2 + $0x40] sm:$0xff] %vm634_vm3, %v555_v24  ;;  %659 = vst.msk [vmem:[#allocation2 + $0xc0] sm:$0xff] %vm634_vm3, %v587_v25 }
  0xe8   :  { %v557_v26 = vpop.permute.xlu0 %556  ;;  %v589_v27 = vpop.permute.xlu1 %588 }
  0xe9   :  { %644 = vst.msk [vmem:[#allocation2 + $0x48] sm:$0xff] %vm634_vm3, %v557_v26  ;;  %660 = vst.msk [vmem:[#allocation2 + $0xc8] sm:$0xff] %vm634_vm3, %v589_v27 }
  0xec   :  { %v173_v28 = vpop.permute.xlu0 %172  ;;  %v675_v29 = vld [vmem:[#allocation2 + $0x40] sm:$0xff]  ;;  %v205_v30 = vpop.permute.xlu1 %204 }
  0xed   :  { %v691_v31 = vld [vmem:[#allocation2 + $0xc0] sm:$0xff]  ;;  %259 = vst.msk [vmem:[#allocation2 + $0x50] sm:$0xff] %vm248_vm1, %v173_v28  ;;  %1332 = vmatprep.mubr.f32.mxu0 %v675_v29  ;;  %275 = vst.msk [vmem:[#allocation2 + $0xd0] sm:$0xff] %vm248_vm1, %v205_v30 }
  0xee   :  { %1356 = vmatprep.mubr.f32.mxu1 %v691_v31 }
  0xf0   :  { %v175_v32 = vpop.permute.xlu0 %174  ;;  %v676_v33 = vld [vmem:[#allocation2 + $0x48] sm:$0xff]  ;;  %v207_v34 = vpop.permute.xlu1 %206 }
  0xf1   :  { %v692_v35 = vld [vmem:[#allocation2 + $0xc8] sm:$0xff]  ;;  %260 = vst.msk [vmem:[#allocation2 + $0x58] sm:$0xff] %vm248_vm1, %v175_v32  ;;  %1333 = vmatmul.mubr.f32.gmra.mxu0 %v676_v33  ;;  %276 = vst.msk [vmem:[#allocation2 + $0xd8] sm:$0xff] %vm248_vm1, %v207_v34 }
  0xf2   :  { %1357 = vmatmul.mubr.f32.gmra.mxu1 %v692_v35 }
  0xf4   :  { %v366_v36 = vpop.permute.xlu0 %365  ;;  %v398_v37 = vpop.permute.xlu1 %397 }
  0xf5   :  { %452 = vst.msk [vmem:[#allocation2 + $0x50] sm:$0xff] %vm441_vm2, %v366_v36  ;;  %468 = vst.msk [vmem:[#allocation2 + $0xd0] sm:$0xff] %vm441_vm2, %v398_v37 }
  0xf8   :  { %v368_v38 = vpop.permute.xlu0 %367  ;;  %v400_v39 = vpop.permute.xlu1 %399 }
  0xf9   :  { %453 = vst.msk [vmem:[#allocation2 + $0x58] sm:$0xff] %vm441_vm2, %v368_v38  ;;  %469 = vst.msk [vmem:[#allocation2 + $0xd8] sm:$0xff] %vm441_vm2, %v400_v39 }
  0xfc   :  { %v559_v40 = vpop.permute.xlu0 %558  ;;  %v591_v41 = vpop.permute.xlu1 %590 }
  0xfd   :  { %645 = vst.msk [vmem:[#allocation2 + $0x50] sm:$0xff] %vm634_vm3, %v559_v40  ;;  %661 = vst.msk [vmem:[#allocation2 + $0xd0] sm:$0xff] %vm634_vm3, %v591_v41 }
 0x100   :  { %v561_v42 = vpop.permute.xlu0 %560 }
 0x101   :  { %v593_v43 = vpop.permute.xlu1 %592  ;;  %646 = vst.msk [vmem:[#allocation2 + $0x58] sm:$0xff] %vm634_vm3, %v561_v42 }
 0x102   :  { %662 = vst.msk [vmem:[#allocation2 + $0xd8] sm:$0xff] %vm634_vm3, %v593_v43 }
 0x104   :  { %v177_v44 = vpop.permute.xlu0 %176  ;;  %v677_v45 = vld [vmem:[#allocation2 + $0x50] sm:$0xff] }
 0x105   :  { %v209_v46 = vpop.permute.xlu1 %208  ;;  %v693_v47 = vld [vmem:[#allocation2 + $0xd0] sm:$0xff]  ;;  %261 = vst.msk [vmem:[#allocation2 + $0x60] sm:$0xff] %vm248_vm1, %v177_v44  ;;  %1335 = vmatprep.mubr.f32.mxu0 %v677_v45 }
 0x106   :  { %277 = vst.msk [vmem:[#allocation2 + $0xe0] sm:$0xff] %vm248_vm1, %v209_v46  ;;  %1359 = vmatprep.mubr.f32.mxu1 %v693_v47 }
 0x108   :  { %v179_v48 = vpop.permute.xlu0 %178  ;;  %v678_v49 = vld [vmem:[#allocation2 + $0x58] sm:$0xff] }
 0x109   :  { %v211_v50 = vpop.permute.xlu1 %210  ;;  %v694_v51 = vld [vmem:[#allocation2 + $0xd8] sm:$0xff]  ;;  %262 = vst.msk [vmem:[#allocation2 + $0x68] sm:$0xff] %vm248_vm1, %v179_v48  ;;  %1336 = vmatmul.mubr.f32.gmra.mxu0 %v678_v49 }
 0x10a   :  { %278 = vst.msk [vmem:[#allocation2 + $0xe8] sm:$0xff] %vm248_vm1, %v211_v50  ;;  %1360 = vmatmul.mubr.f32.gmra.mxu1 %v694_v51 }
 0x10c   :  { %v370_v52 = vpop.permute.xlu0 %369 }
 0x10d   :  { %v402_v53 = vpop.permute.xlu1 %401  ;;  %454 = vst.msk [vmem:[#allocation2 + $0x60] sm:$0xff] %vm441_vm2, %v370_v52 }
 0x10e   :  { %470 = vst.msk [vmem:[#allocation2 + $0xe0] sm:$0xff] %vm441_vm2, %v402_v53 }
 0x110   :  { %v372_v54 = vpop.permute.xlu0 %371 }
 0x111   :  { %v404_v55 = vpop.permute.xlu1 %403  ;;  %455 = vst.msk [vmem:[#allocation2 + $0x68] sm:$0xff] %vm441_vm2, %v372_v54 }
 0x112   :  { %471 = vst.msk [vmem:[#allocation2 + $0xe8] sm:$0xff] %vm441_vm2, %v404_v55 }
 0x114   :  { %v563_v56 = vpop.permute.xlu0 %562 }
 0x115   :  { %v595_v57 = vpop.permute.xlu1 %594  ;;  %647 = vst.msk [vmem:[#allocation2 + $0x60] sm:$0xff] %vm634_vm3, %v563_v56 }
 0x116   :  { %663 = vst.msk [vmem:[#allocation2 + $0xe0] sm:$0xff] %vm634_vm3, %v595_v57 }
 0x118   :  { %v565_v58 = vpop.permute.xlu0 %564 }
 0x119   :  { %v597_v59 = vpop.permute.xlu1 %596  ;;  %648 = vst.msk [vmem:[#allocation2 + $0x68] sm:$0xff] %vm634_vm3, %v565_v58 }
 0x11a   :  { %664 = vst.msk [vmem:[#allocation2 + $0xe8] sm:$0xff] %vm634_vm3, %v597_v59 }
 0x11c   :  { %v181_v60 = vpop.permute.xlu0 %180  ;;  %v679_v61 = vld [vmem:[#allocation2 + $0x60] sm:$0xff] }
 0x11d   :  { %v213_v62 = vpop.permute.xlu1 %212  ;;  %v695_v63 = vld [vmem:[#allocation2 + $0xe0] sm:$0xff]  ;;  %263 = vst.msk [vmem:[#allocation2 + $0x70] sm:$0xff] %vm248_vm1, %v181_v60  ;;  %1338 = vmatprep.mubr.f32.mxu0 %v679_v61 }
 0x11e   :  { %279 = vst.msk [vmem:[#allocation2 + $0xf0] sm:$0xff] %vm248_vm1, %v213_v62  ;;  %1362 = vmatprep.mubr.f32.mxu1 %v695_v63 }
 0x120   :  { %v183_v0 = vpop.permute.xlu0 %182  ;;  %v680_v1 = vld [vmem:[#allocation2 + $0x68] sm:$0xff] }
 0x121   :  { %v215_v2 = vpop.permute.xlu1 %214  ;;  %v696_v3 = vld [vmem:[#allocation2 + $0xe8] sm:$0xff]  ;;  %264 = vst.msk [vmem:[#allocation2 + $0x78] sm:$0xff] %vm248_vm1, %v183_v0  ;;  %1339 = vmatmul.mubr.f32.gmra.mxu0 %v680_v1 }
 0x122   :  { %280 = vst.msk [vmem:[#allocation2 + $0xf8] sm:$0xff] %vm248_vm1, %v215_v2  ;;  %1363 = vmatmul.mubr.f32.gmra.mxu1 %v696_v3 }
 0x124   :  { %v374_v4 = vpop.permute.xlu0 %373 }
 0x125   :  { %v406_v5 = vpop.permute.xlu1 %405  ;;  %456 = vst.msk [vmem:[#allocation2 + $0x70] sm:$0xff] %vm441_vm2, %v374_v4 }
 0x126   :  { %472 = vst.msk [vmem:[#allocation2 + $0xf0] sm:$0xff] %vm441_vm2, %v406_v5 }
 0x128   :  { %v376_v6 = vpop.permute.xlu0 %375 }
 0x129   :  { %v408_v7 = vpop.permute.xlu1 %407  ;;  %457 = vst.msk [vmem:[#allocation2 + $0x78] sm:$0xff] %vm441_vm2, %v376_v6 }
 0x12a   :  { %473 = vst.msk [vmem:[#allocation2 + $0xf8] sm:$0xff] %vm441_vm2, %v408_v7 }
 0x12c   :  { %v567_v8 = vpop.permute.xlu0 %566 }
 0x12d   :  { %v599_v9 = vpop.permute.xlu1 %598  ;;  %649 = vst.msk [vmem:[#allocation2 + $0x70] sm:$0xff] %vm634_vm3, %v567_v8 }
 0x12e   :  { %665 = vst.msk [vmem:[#allocation2 + $0xf0] sm:$0xff] %vm634_vm3, %v599_v9 }
 0x130   :  { %v569_v10 = vpop.permute.xlu0 %568 }
 0x131   :  { %v601_v11 = vpop.permute.xlu1 %600  ;;  %650 = vst.msk [vmem:[#allocation2 + $0x78] sm:$0xff] %vm634_vm3, %v569_v10 }
 0x132   :  { %666 = vst.msk [vmem:[#allocation2 + $0xf8] sm:$0xff] %vm634_vm3, %v601_v11 }
 0x134   :  { %v681_v12 = vld [vmem:[#allocation2 + $0x70] sm:$0xff] }
 0x135   :  { %v697_v13 = vld [vmem:[#allocation2 + $0xf0] sm:$0xff]  ;;  %1341 = vmatprep.mubr.f32.mxu0 %v681_v12 }
 0x136   :  { %1365 = vmatprep.mubr.f32.mxu1 %v697_v13 }
 0x138   :  { %v682_v14 = vld [vmem:[#allocation2 + $0x78] sm:$0xff] }
 0x139   :  { %v698_v15 = vld [vmem:[#allocation2 + $0xf8] sm:$0xff]  ;;  %1342 = vmatmul.mubr.f32.gmra.mxu0 %v682_v14 }
 0x13a   :  { %1366 = vmatmul.mubr.f32.gmra.mxu1 %v698_v15 }
 0x151   :  { %v1322_v17 = vpop.f32.mrf.mxu0 }
 0x152   :  { %v1346_v18 = vpop.f32.mrf.mxu1  ;;  %v794_v19 = vadd.f32 %v1322_v17, %v2164_v16 }
 0x153   :  { %v874_v20 = vadd.f32 %v1346_v18, %v2164_v16  ;;  %v788_v21 = vpop.f32.mrf.mxu0 }
 0x154   :  { %v868_v22 = vpop.f32.mrf.mxu1  ;;  %v2168_v23 = vmax.f32 %v794_v19, 0.0  ;;  %v789_v25 = vadd.f32 %v2164_v16, %v788_v21 }
 0x155   :  { %v2170_v24 = vmax.f32 %v874_v20, 0.0  ;;  %v869_v26 = vadd.f32 %v2164_v16, %v868_v22 }
 0x156   :  { %v2174_v27 = vmax.f32 %v789_v25, 0.0  ;;  %v980_v30 = vmul.f32 %v2168_v23, %v2168_v23 }
 0x157   :  { %v2176_v28 = vmax.f32 %v869_v26, 0.0  ;;  %v996_v29 = vmul.f32 %v2170_v24, %v2170_v24 }
 0x158   :  { %v979_v31 = vmul.f32 %v2174_v27, %v2174_v27  ;;  %v1014_v34 = vsel %vm55_vm0, %v980_v30, 0.0 }
 0x159   :  { %v995_v32 = vmul.f32 %v2176_v28, %v2176_v28  ;;  %v1062_v33 = vsel %vm55_vm0, %v996_v29, 0.0  ;;  %1015 = vadd.xlane.f32.xlu1 %v1014_v34 }
 0x15a   :  { %1063 = vadd.xlane.f32.xlu0 %v1062_v33  ;;  %v1011_v36 = vsel %vm55_vm0, %v979_v31, 0.0 }
 0x15b   :  { %v1059_v35 = vsel %vm55_vm0, %v995_v32, 0.0 }
 0x15d   :  { %1060 = vadd.xlane.f32.xlu1 %v1059_v35 }
 0x15e   :  { %1012 = vadd.xlane.f32.xlu0 %v1011_v36 }
 0x169   :  { %v1325_v37 = vpop.f32.mrf.mxu0 }
 0x16a   :  { %v1349_v38 = vpop.f32.mrf.mxu1  ;;  %v804_v39 = vadd.f32 %v1325_v37, %v2164_v16 }
 0x16b   :  { %v884_v40 = vadd.f32 %v1349_v38, %v2164_v16  ;;  %v798_v41 = vpop.f32.mrf.mxu0 }
 0x16c   :  { %v878_v42 = vpop.f32.mrf.mxu1  ;;  %v2192_v43 = vmax.f32 %v804_v39, 0.0  ;;  %v799_v45 = vadd.f32 %v2164_v16, %v798_v41 }
 0x16d   :  { %v2194_v44 = vmax.f32 %v884_v40, 0.0  ;;  %v879_v46 = vadd.f32 %v2164_v16, %v878_v42 }
 0x16e   :  { %v982_v47 = vmul.f32 %v2192_v43, %v2192_v43  ;;  %v2204_v50 = vmax.f32 %v799_v45, 0.0 }
 0x16f   :  { %v998_v48 = vmul.f32 %v2194_v44, %v2194_v44  ;;  %v2202_v49 = vmax.f32 %v879_v46, 0.0 }
 0x170   :  { %v1020_v52 = vsel %vm55_vm0, %v982_v47, 0.0  ;;  %v981_v55 = vmul.f32 %v2204_v50, %v2204_v50 }
 0x171   :  { %v997_v51 = vmul.f32 %v2202_v49, %v2202_v49  ;;  %1021 = vadd.xlane.f32.xlu0 %v1020_v52  ;;  %v1068_v54 = vsel %vm55_vm0, %v998_v48, 0.0 }
 0x172   :  { %v1017_v56 = vsel %vm55_vm0, %v981_v55, 0.0 }
 0x173   :  { %v1065_v53 = vsel %vm55_vm0, %v997_v51, 0.0 }
 0x174   :  { %1066 = vadd.xlane.f32.xlu1 %v1065_v53 }
 0x175   :  { %1069 = vadd.xlane.f32.xlu0 %v1068_v54 }
 0x179   :  { %1018 = vadd.xlane.f32.xlu0 %v1017_v56 }
 0x181   :  { %v1328_v57 = vpop.f32.mrf.mxu0 }
 0x182   :  { %v1352_v58 = vpop.f32.mrf.mxu1  ;;  %v814_v59 = vadd.f32 %v1328_v57, %v2164_v16 }
 0x183   :  { %v894_v60 = vadd.f32 %v1352_v58, %v2164_v16  ;;  %v808_v61 = vpop.f32.mrf.mxu0 }
 0x184   :  { %v888_v62 = vpop.f32.mrf.mxu1  ;;  %v2216_v63 = vmax.f32 %v814_v59, 0.0  ;;  %v809_v0 = vadd.f32 %v2164_v16, %v808_v61 }
 0x185   :  { %v2219_v1 = vmax.f32 %v894_v60, 0.0  ;;  %v889_v2 = vadd.f32 %v2164_v16, %v888_v62 }
 0x186   :  { %v984_v3 = vmul.f32 %v2216_v63, %v2216_v63  ;;  %v2224_v4 = vmax.f32 %v809_v0, 0.0 }
 0x187   :  { %v1000_v5 = vmul.f32 %v2219_v1, %v2219_v1  ;;  %v2228_v6 = vmax.f32 %v889_v2, 0.0 }
 0x188   :  { %v983_v7 = vmul.f32 %v2224_v4, %v2224_v4  ;;  %v1026_v8 = vsel %vm55_vm0, %v984_v3, 0.0 }
 0x189   :  { %1027 = vadd.xlane.f32.xlu0 %v1026_v8  ;;  %v999_v9 = vmul.f32 %v2228_v6, %v2228_v6  ;;  %v1074_v11 = vsel %vm55_vm0, %v1000_v5, 0.0 }
 0x18a   :  { %v1023_v10 = vsel %vm55_vm0, %v983_v7, 0.0 }
 0x18b   :  { %1024 = vadd.xlane.f32.xlu1 %v1023_v10  ;;  %v1071_v12 = vsel %vm55_vm0, %v999_v9, 0.0 }
 0x18d   :  { %1075 = vadd.xlane.f32.xlu0 %v1074_v11 }
 0x18f   :  { %1072 = vadd.xlane.f32.xlu1 %v1071_v12 }
 0x199   :  { %v1331_v13 = vpop.f32.mrf.mxu0 }
 0x19a   :  { %v1355_v14 = vpop.f32.mrf.mxu1  ;;  %v824_v15 = vadd.f32 %v1331_v13, %v2164_v16 }
 0x19b   :  { %v904_v17 = vadd.f32 %v1355_v14, %v2164_v16  ;;  %v818_v18 = vpop.f32.mrf.mxu0 }
 0x19c   :  { %v898_v19 = vpop.f32.mrf.mxu1  ;;  %v2240_v20 = vmax.f32 %v824_v15, 0.0  ;;  %v819_v21 = vadd.f32 %v2164_v16, %v818_v18 }
 0x19d   :  { %v2243_v22 = vmax.f32 %v904_v17, 0.0  ;;  %v899_v25 = vadd.f32 %v2164_v16, %v898_v19 }
 0x19e   :  { %v986_v26 = vmul.f32 %v2240_v20, %v2240_v20  ;;  %v2248_v29 = vmax.f32 %v819_v21, 0.0 }
 0x19f   :  { %v1002_v30 = vmul.f32 %v2243_v22, %v2243_v22  ;;  %v2252_v31 = vmax.f32 %v899_v25, 0.0 }
 0x1a0   :  { %v985_v32 = vmul.f32 %v2248_v29, %v2248_v29  ;;  %v1032_v33 = vsel %vm55_vm0, %v986_v26, 0.0 }
 0x1a1   :  { %1033 = vadd.xlane.f32.xlu0 %v1032_v33  ;;  %v1001_v34 = vmul.f32 %v2252_v31, %v2252_v31  ;;  %v1080_v36 = vsel %vm55_vm0, %v1002_v30, 0.0 }
 0x1a2   :  { %v1029_v35 = vsel %vm55_vm0, %v985_v32, 0.0 }
 0x1a3   :  { %1030 = vadd.xlane.f32.xlu1 %v1029_v35  ;;  %v1077_v37 = vsel %vm55_vm0, %v1001_v34, 0.0 }
 0x1a5   :  { %1081 = vadd.xlane.f32.xlu0 %v1080_v36 }
 0x1a7   :  { %1078 = vadd.xlane.f32.xlu1 %v1077_v37 }
 0x1b1   :  { %v1334_v38 = vpop.f32.mrf.mxu0 }
 0x1b2   :  { %v1358_v39 = vpop.f32.mrf.mxu1  ;;  %v834_v40 = vadd.f32 %v1334_v38, %v2164_v16 }
 0x1b3   :  { %v914_v41 = vadd.f32 %v1358_v39, %v2164_v16  ;;  %v828_v42 = vpop.f32.mrf.mxu0 }
 0x1b4   :  { %v908_v45 = vpop.f32.mrf.mxu1  ;;  %v2264_v46 = vmax.f32 %v834_v40, 0.0  ;;  %v829_v47 = vadd.f32 %v2164_v16, %v828_v42 }
 0x1b5   :  { %v2267_v48 = vmax.f32 %v914_v41, 0.0  ;;  %v909_v51 = vadd.f32 %v2164_v16, %v908_v45 }
 0x1b6   :  { %v988_v52 = vmul.f32 %v2264_v46, %v2264_v46  ;;  %v2272_v53 = vmax.f32 %v829_v47, 0.0 }
 0x1b7   :  { %v1004_v54 = vmul.f32 %v2267_v48, %v2267_v48  ;;  %v2276_v55 = vmax.f32 %v909_v51, 0.0 }
 0x1b8   :  { %v987_v56 = vmul.f32 %v2272_v53, %v2272_v53  ;;  %v1038_v57 = vsel %vm55_vm0, %v988_v52, 0.0 }
 0x1b9   :  { %1039 = vadd.xlane.f32.xlu0 %v1038_v57  ;;  %v1003_v58 = vmul.f32 %v2276_v55, %v2276_v55  ;;  %v1086_v60 = vsel %vm55_vm0, %v1004_v54, 0.0 }
 0x1ba   :  { %v1035_v59 = vsel %vm55_vm0, %v987_v56, 0.0 }
 0x1bb   :  { %1036 = vadd.xlane.f32.xlu1 %v1035_v59  ;;  %v1083_v61 = vsel %vm55_vm0, %v1003_v58, 0.0 }
 0x1bd   :  { %1087 = vadd.xlane.f32.xlu0 %v1086_v60 }
 0x1bf   :  { %1084 = vadd.xlane.f32.xlu1 %v1083_v61 }
 0x1c9   :  { %v1337_v62 = vpop.f32.mrf.mxu0 }
 0x1ca   :  { %v1361_v0 = vpop.f32.mrf.mxu1  ;;  %v844_v2 = vadd.f32 %v1337_v62, %v2164_v16 }
 0x1cb   :  { %v924_v3 = vadd.f32 %v1361_v0, %v2164_v16  ;;  %v838_v5 = vpop.f32.mrf.mxu0 }
 0x1cc   :  { %v918_v7 = vpop.f32.mrf.mxu1  ;;  %v2288_v8 = vmax.f32 %v844_v2, 0.0  ;;  %v839_v9 = vadd.f32 %v2164_v16, %v838_v5 }
 0x1cd   :  { %v2291_v10 = vmax.f32 %v924_v3, 0.0  ;;  %v919_v11 = vadd.f32 %v2164_v16, %v918_v7 }
 0x1ce   :  { %v990_v12 = vmul.f32 %v2288_v8, %v2288_v8  ;;  %v2296_v13 = vmax.f32 %v839_v9, 0.0 }
 0x1cf   :  { %v1006_v14 = vmul.f32 %v2291_v10, %v2291_v10  ;;  %v2300_v15 = vmax.f32 %v919_v11, 0.0 }
 0x1d0   :  { %v989_v17 = vmul.f32 %v2296_v13, %v2296_v13  ;;  %v1044_v18 = vsel %vm55_vm0, %v990_v12, 0.0 }
 0x1d1   :  { %1045 = vadd.xlane.f32.xlu0 %v1044_v18  ;;  %v1005_v19 = vmul.f32 %v2300_v15, %v2300_v15  ;;  %v1092_v25 = vsel %vm55_vm0, %v1006_v14, 0.0 }
 0x1d2   :  { %v1041_v21 = vsel %vm55_vm0, %v989_v17, 0.0 }
 0x1d3   :  { %1042 = vadd.xlane.f32.xlu1 %v1041_v21  ;;  %v1089_v26 = vsel %vm55_vm0, %v1005_v19, 0.0 }
 0x1d5   :  { %1093 = vadd.xlane.f32.xlu0 %v1092_v25 }
 0x1d7   :  { %1090 = vadd.xlane.f32.xlu1 %v1089_v26 }
 0x1e1   :  { %v1340_v30 = vpop.f32.mrf.mxu0 }
 0x1e2   :  { %v1364_v32 = vpop.f32.mrf.mxu1  ;;  %v854_v33 = vadd.f32 %v1340_v30, %v2164_v16  ;;  %v1016_v35 = vpop.xlane.xlu1 %1015 }
 0x1e3   :  { %v1064_v34 = vpop.xlane.xlu0 %1063  ;;  %v934_v36 = vadd.f32 %v1364_v32, %v2164_v16  ;;  %v1108_v38 = vmax.f32 %v1016_v35, 1e-24  ;;  %v848_v39 = vpop.f32.mrf.mxu0 }
 0x1e4   :  { %v1124_v37 = vmax.f32 %v1064_v34, 1e-24  ;;  %v928_v40 = vpop.f32.mrf.mxu1  ;;  %v2312_v41 = vmax.f32 %v854_v33, 0.0  ;;  %v849_v42 = vadd.f32 %v2164_v16, %v848_v39 }
 0x1e5   :  { %v2315_v45 = vmax.f32 %v934_v36, 0.0  ;;  %v929_v47 = vadd.f32 %v2164_v16, %v928_v40 }
 0x1e6   :  { %1403 = vrsqrt.f32 %v1124_v37  ;;  %v992_v51 = vmul.f32 %v2312_v41, %v2312_v41  ;;  %v2320_v52 = vmax.f32 %v849_v42, 0.0  ;;  %v1061_v56 = vpop.xlane.xlu1 %1060 }
 0x1e7   :  { %1405 = vrsqrt.f32 %v1108_v38  ;;  %v1008_v54 = vmul.f32 %v2315_v45, %v2315_v45  ;;  %v1013_v57 = vpop.xlane.xlu0 %1012  ;;  %v2324_v58 = vmax.f32 %v929_v47, 0.0  ;;  %v1123_v59 = vmax.f32 %v1061_v56, 1e-24 }
 0x1e8   :  { %v1107_v60 = vmax.f32 %v1013_v57, 1e-24  ;;  %v991_v61 = vmul.f32 %v2320_v52, %v2320_v52  ;;  %v1050_v62 = vsel %vm55_vm0, %v992_v51, 0.0 }
 0x1e9   :  { %1407 = vrsqrt.f32 %v1123_v59  ;;  %1051 = vadd.xlane.f32.xlu0 %v1050_v62  ;;  %v1007_v0 = vmul.f32 %v2324_v58, %v2324_v58  ;;  %v1098_v3 = vsel %vm55_vm0, %v1008_v54, 0.0 }
 0x1ea   :  { %1409 = vrsqrt.f32 %v1107_v60  ;;  %v1047_v2 = vsel %vm55_vm0, %v991_v61, 0.0 }
 0x1eb   :  { %1048 = vadd.xlane.f32.xlu1 %v1047_v2  ;;  %v1095_v5 = vsel %vm55_vm0, %v1007_v0, 0.0 }
 0x1ed   :  { %1099 = vadd.xlane.f32.xlu0 %v1098_v3 }
 0x1ef   :  { %1096 = vadd.xlane.f32.xlu1 %v1095_v5 }
 0x1f3   :  { %v1404_v7 = vpop.eup %1403 }
 0x1f4   :  { %v1406_v9 = vpop.eup %1405  ;;  %v1188_v11 = vmul.f32 %v1404_v7, %v2170_v24 }
 0x1f5   :  { %v1172_v12 = vmul.f32 %v1406_v9, %v2168_v23 }
 0x1f6   :  { %1220 = vst.msk [vmem:[%s2524_s6 + $0x88] sm:$0xff] %vm55_vm0, %v1188_v11  ;;  %v1408_v14 = vpop.eup %1407 }
 0x1f7   :  { %1204 = vst.msk [vmem:[%s2524_s6 + $0x8] sm:$0xff] %vm55_vm0, %v1172_v12  ;;  %v1410_v17 = vpop.eup %1409  ;;  %v1187_v18 = vmul.f32 %v1408_v14, %v2176_v28 }
 0x1f8   :  { %v1171_v19 = vmul.f32 %v1410_v17, %v2174_v27 }
 0x1f9   :  { %1219 = vst.msk [vmem:[%s2524_s6 + $0x80] sm:$0xff] %vm55_vm0, %v1187_v18  ;;  %v1343_v23 = vpop.f32.mrf.mxu0 }
 0x1fa   :  { %v1367_v24 = vpop.f32.mrf.mxu1  ;;  %1203 = vst.msk [vmem:[%s2524_s6] sm:$0xff] %vm55_vm0, %v1171_v19  ;;  %v864_v21 = vadd.f32 %v1343_v23, %v2164_v16  ;;  %v1022_v25 = vpop.xlane.xlu0 %1021 }
 0x1fb   :  { %v944_v26 = vadd.f32 %v1367_v24, %v2164_v16  ;;  %v1110_v28 = vmax.f32 %v1022_v25, 1e-24  ;;  %v858_v30 = vpop.f32.mrf.mxu0 }
 0x1fc   :  { %v938_v27 = vpop.f32.mrf.mxu1  ;;  %v2356_v32 = vmax.f32 %v864_v21, 0.0  ;;  %v859_v33 = vadd.f32 %v2164_v16, %v858_v30 }
 0x1fd   :  { %v2359_v34 = vmax.f32 %v944_v26, 0.0  ;;  %v1067_v35 = vpop.xlane.xlu1 %1066  ;;  %v939_v36 = vadd.f32 %v2164_v16, %v938_v27  ;;  %1411 = vrsqrt.f32 %v1110_v28 }
 0x1fe   :  { %v1125_v37 = vmax.f32 %v1067_v35, 1e-24  ;;  %v994_v38 = vmul.f32 %v2356_v32, %v2356_v32  ;;  %v2364_v39 = vmax.f32 %v859_v33, 0.0  ;;  %v1070_v47 = vpop.xlane.xlu0 %1069 }
 0x1ff   :  { %v1010_v40 = vmul.f32 %v2359_v34, %v2359_v34  ;;  %v2368_v42 = vmax.f32 %v939_v36, 0.0  ;;  %v1126_v51 = vmax.f32 %v1070_v47, 1e-24 }
 0x200   :  { %1413 = vrsqrt.f32 %v1125_v37  ;;  %v993_v54 = vmul.f32 %v2364_v39, %v2364_v39  ;;  %v1056_v16 = vsel %vm55_vm0, %v994_v38, 0.0 }
 0x201   :  { %1415 = vrsqrt.f32 %v1126_v51  ;;  %1057 = vadd.xlane.f32.xlu0 %v1056_v16  ;;  %v1009_v56 = vmul.f32 %v2368_v42, %v2368_v42  ;;  %v1104_v60 = vsel %vm55_vm0, %v1010_v40, 0.0 }
 0x202   :  { %v1019_v57 = vpop.xlane.xlu0 %1018  ;;  %v1053_v59 = vsel %vm55_vm0, %v993_v54, 0.0 }
 0x203   :  { %v1109_v61 = vmax.f32 %v1019_v57, 1e-24  ;;  %1054 = vadd.xlane.f32.xlu1 %v1053_v59  ;;  %v1101_v62 = vsel %vm55_vm0, %v1009_v56, 0.0 }
 0x205   :  { %1417 = vrsqrt.f32 %v1109_v61  ;;  %1105 = vadd.xlane.f32.xlu0 %v1104_v60 }
 0x207   :  { %1102 = vadd.xlane.f32.xlu1 %v1101_v62 }
 0x20a   :  { %v1412_v0 = vpop.eup %1411 }
 0x20b   :  { %v1174_v2 = vmul.f32 %v1412_v0, %v2192_v43 }
 0x20d   :  { %v1414_v3 = vpop.eup %1413  ;;  %1206 = vst.msk [vmem:[%s2524_s6 + $0x18] sm:$0xff] %vm55_vm0, %v1174_v2 }
 0x20e   :  { %v1189_v5 = vmul.f32 %v1414_v3, %v2202_v49  ;;  %v1416_v7 = vpop.eup %1415 }
 0x20f   :  { %v1190_v9 = vmul.f32 %v1416_v7, %v2194_v44 }
 0x210   :  { %1221 = vst.msk [vmem:[%s2524_s6 + $0x90] sm:$0xff] %vm55_vm0, %v1189_v5 }
 0x211   :  { %1222 = vst.msk [vmem:[%s2524_s6 + $0x98] sm:$0xff] %vm55_vm0, %v1190_v9 }
 0x212   :  { %v1418_v43 = vpop.eup %1417  ;;  %v1028_v11 = vpop.xlane.xlu0 %1027 }
 0x213   :  { %v1173_v12 = vmul.f32 %v1418_v43, %v2204_v50  ;;  %v1112_v14 = vmax.f32 %v1028_v11, 1e-24 }
 0x214   :  { %v1025_v17 = vpop.xlane.xlu1 %1024 }
 0x215   :  { %1205 = vst.msk [vmem:[%s2524_s6 + $0x10] sm:$0xff] %vm55_vm0, %v1173_v12  ;;  %1419 = vrsqrt.f32 %v1112_v14  ;;  %v1111_v49 = vmax.f32 %v1025_v17, 1e-24 }
 0x216   :  { %v1076_v18 = vpop.xlane.xlu0 %1075 }
 0x217   :  { %1421 = vrsqrt.f32 %v1111_v49  ;;  %v1128_v44 = vmax.f32 %v1076_v18, 1e-24 }
 0x218   :  { %v1073_v19 = vpop.xlane.xlu1 %1072 }
 0x219   :  { %1423 = vrsqrt.f32 %v1128_v44  ;;  %v1127_v23 = vmax.f32 %v1073_v19, 1e-24 }
 0x21b   :  { %1425 = vrsqrt.f32 %v1127_v23 }
 0x222   :  { %v1420_v24 = vpop.eup %1419 }
 0x223   :  { %v1176_v21 = vmul.f32 %v1420_v24, %v2216_v63 }
 0x224   :  { %v1422_v50 = vpop.eup %1421 }
 0x225   :  { %1208 = vst.msk [vmem:[%s2524_s6 + $0x28] sm:$0xff] %vm55_vm0, %v1176_v21  ;;  %v1175_v25 = vmul.f32 %v1422_v50, %v2224_v4 }
 0x226   :  { %v1424_v26 = vpop.eup %1423 }
 0x227   :  { %1207 = vst.msk [vmem:[%s2524_s6 + $0x20] sm:$0xff] %vm55_vm0, %v1175_v25  ;;  %v1192_v28 = vmul.f32 %v1424_v26, %v2219_v1 }
 0x228   :  { %v1426_v30 = vpop.eup %1425 }
 0x229   :  { %1224 = vst.msk [vmem:[%s2524_s6 + $0xa8] sm:$0xff] %vm55_vm0, %v1192_v28  ;;  %v1191_v63 = vmul.f32 %v1426_v30, %v2228_v6 }
 0x22a   :  { %v1034_v27 = vpop.xlane.xlu0 %1033 }
 0x22b   :  { %1223 = vst.msk [vmem:[%s2524_s6 + $0xa0] sm:$0xff] %vm55_vm0, %v1191_v63  ;;  %v1114_v4 = vmax.f32 %v1034_v27, 1e-24 }
 0x22c   :  { %v1031_v33 = vpop.xlane.xlu1 %1030 }
 0x22d   :  { %1427 = vrsqrt.f32 %v1114_v4  ;;  %v1113_v35 = vmax.f32 %v1031_v33, 1e-24 }
 0x22e   :  { %v1082_v36 = vpop.xlane.xlu0 %1081 }
 0x22f   :  { %1429 = vrsqrt.f32 %v1113_v35  ;;  %v1130_v1 = vmax.f32 %v1082_v36, 1e-24 }
 0x230   :  { %v1079_v37 = vpop.xlane.xlu1 %1078 }
 0x231   :  { %1431 = vrsqrt.f32 %v1130_v1  ;;  %v1129_v38 = vmax.f32 %v1079_v37, 1e-24 }
 0x233   :  { %1433 = vrsqrt.f32 %v1129_v38 }
 0x23a   :  { %v1428_v40 = vpop.eup %1427 }
 0x23b   :  { %v1178_v6 = vmul.f32 %v1428_v40, %v2240_v20 }
 0x23c   :  { %v1430_v47 = vpop.eup %1429 }
 0x23d   :  { %1210 = vst.msk [vmem:[%s2524_s6 + $0x38] sm:$0xff] %vm55_vm0, %v1178_v6  ;;  %v1177_v51 = vmul.f32 %v1430_v47, %v2248_v29 }
 0x23e   :  { %v1432_v54 = vpop.eup %1431 }
 0x23f   :  { %1209 = vst.msk [vmem:[%s2524_s6 + $0x30] sm:$0xff] %vm55_vm0, %v1177_v51  ;;  %v1194_v16 = vmul.f32 %v1432_v54, %v2243_v22 }
 0x240   :  { %v1434_v56 = vpop.eup %1433 }
 0x241   :  { %1226 = vst.msk [vmem:[%s2524_s6 + $0xb8] sm:$0xff] %vm55_vm0, %v1194_v16  ;;  %v1193_v20 = vmul.f32 %v1434_v56, %v2252_v31 }
 0x242   :  { %v1040_v57 = vpop.xlane.xlu0 %1039 }
 0x243   :  { %1225 = vst.msk [vmem:[%s2524_s6 + $0xb0] sm:$0xff] %vm55_vm0, %v1193_v20  ;;  %v1116_v29 = vmax.f32 %v1040_v57, 1e-24 }
 0x244   :  { %v1037_v59 = vpop.xlane.xlu1 %1036 }
 0x245   :  { %1435 = vrsqrt.f32 %v1116_v29  ;;  %v1115_v60 = vmax.f32 %v1037_v59, 1e-24 }
 0x246   :  { %v1088_v61 = vpop.xlane.xlu0 %1087 }
 0x247   :  { %1437 = vrsqrt.f32 %v1115_v60  ;;  %v1132_v22 = vmax.f32 %v1088_v61, 1e-24 }
 0x248   :  { %v1085_v62 = vpop.xlane.xlu1 %1084 }
 0x249   :  { %1439 = vrsqrt.f32 %v1132_v22  ;;  %v1131_v0 = vmax.f32 %v1085_v62, 1e-24 }
 0x24b   :  { %1441 = vrsqrt.f32 %v1131_v0 }
 0x252   :  { %v1436_v2 = vpop.eup %1435 }
 0x253   :  { %v1180_v31 = vmul.f32 %v1436_v2, %v2264_v46 }
 0x254   :  { %v1438_v3 = vpop.eup %1437 }
 0x255   :  { %1212 = vst.msk [vmem:[%s2524_s6 + $0x48] sm:$0xff] %vm55_vm0, %v1180_v31  ;;  %v1179_v5 = vmul.f32 %v1438_v3, %v2272_v53 }
 0x256   :  { %v1440_v7 = vpop.eup %1439 }
 0x257   :  { %1211 = vst.msk [vmem:[%s2524_s6 + $0x40] sm:$0xff] %vm55_vm0, %v1179_v5  ;;  %v1196_v9 = vmul.f32 %v1440_v7, %v2267_v48 }
 0x258   :  { %v1442_v43 = vpop.eup %1441 }
 0x259   :  { %1228 = vst.msk [vmem:[%s2524_s6 + $0xc8] sm:$0xff] %vm55_vm0, %v1196_v9  ;;  %v1195_v46 = vmul.f32 %v1442_v43, %v2276_v55 }
 0x25a   :  { %v1046_v11 = vpop.xlane.xlu0 %1045 }
 0x25b   :  { %1227 = vst.msk [vmem:[%s2524_s6 + $0xc0] sm:$0xff] %vm55_vm0, %v1195_v46  ;;  %v1118_v53 = vmax.f32 %v1046_v11, 1e-24 }
 0x25c   :  { %v1043_v12 = vpop.xlane.xlu1 %1042 }
 0x25d   :  { %1443 = vrsqrt.f32 %v1118_v53  ;;  %v1117_v14 = vmax.f32 %v1043_v12, 1e-24 }
 0x25e   :  { %v1094_v17 = vpop.xlane.xlu0 %1093 }
 0x25f   :  { %1445 = vrsqrt.f32 %v1117_v14  ;;  %v1134_v48 = vmax.f32 %v1094_v17, 1e-24 }
 0x260   :  { %v1091_v49 = vpop.xlane.xlu1 %1090 }
 0x261   :  { %1447 = vrsqrt.f32 %v1134_v48  ;;  %v1133_v18 = vmax.f32 %v1091_v49, 1e-24 }
 0x263   :  { %1449 = vrsqrt.f32 %v1133_v18 }
 0x26a   :  { %v1444_v44 = vpop.eup %1443 }
 0x26b   :  { %v1182_v55 = vmul.f32 %v1444_v44, %v2288_v8 }
 0x26c   :  { %v1446_v19 = vpop.eup %1445 }
 0x26d   :  { %1214 = vst.msk [vmem:[%s2524_s6 + $0x58] sm:$0xff] %vm55_vm0, %v1182_v55  ;;  %v1181_v23 = vmul.f32 %v1446_v19, %v2296_v13 }
 0x26e   :  { %v1448_v24 = vpop.eup %1447 }
 0x26f   :  { %1213 = vst.msk [vmem:[%s2524_s6 + $0x50] sm:$0xff] %vm55_vm0, %v1181_v23  ;;  %v1198_v21 = vmul.f32 %v1448_v24, %v2291_v10 }
 0x270   :  { %v1450_v50 = vpop.eup %1449 }
 0x271   :  { %1230 = vst.msk [vmem:[%s2524_s6 + $0xd8] sm:$0xff] %vm55_vm0, %v1198_v21  ;;  %v1197_v8 = vmul.f32 %v1450_v50, %v2300_v15 }
 0x272   :  { %v1052_v25 = vpop.xlane.xlu0 %1051 }
 0x273   :  { %1229 = vst.msk [vmem:[%s2524_s6 + $0xd0] sm:$0xff] %vm55_vm0, %v1197_v8  ;;  %v1120_v13 = vmax.f32 %v1052_v25, 1e-24 }
 0x274   :  { %v1049_v26 = vpop.xlane.xlu1 %1048 }
 0x275   :  { %1451 = vrsqrt.f32 %v1120_v13  ;;  %v1119_v28 = vmax.f32 %v1049_v26, 1e-24 }
 0x276   :  { %v1100_v30 = vpop.xlane.xlu0 %1099 }
 0x277   :  { %1453 = vrsqrt.f32 %v1119_v28  ;;  %v1136_v10 = vmax.f32 %v1100_v30, 1e-24 }
 0x278   :  { %v1097_v63 = vpop.xlane.xlu1 %1096 }
 0x279   :  { %1455 = vrsqrt.f32 %v1136_v10  ;;  %v1135_v27 = vmax.f32 %v1097_v63, 1e-24 }
 0x27b   :  { %1457 = vrsqrt.f32 %v1135_v27 }
 0x282   :  { %v1452_v4 = vpop.eup %1451 }
 0x283   :  { %v1184_v15 = vmul.f32 %v1452_v4, %v2312_v41 }
 0x284   :  { %v1454_v33 = vpop.eup %1453 }
 0x285   :  { %1216 = vst.msk [vmem:[%s2524_s6 + $0x68] sm:$0xff] %vm55_vm0, %v1184_v15  ;;  %v1183_v35 = vmul.f32 %v1454_v33, %v2320_v52 }
 0x286   :  { %v1456_v36 = vpop.eup %1455 }
 0x287   :  { %1215 = vst.msk [vmem:[%s2524_s6 + $0x60] sm:$0xff] %vm55_vm0, %v1183_v35  ;;  %v1200_v1 = vmul.f32 %v1456_v36, %v2315_v45 }
 0x288   :  { %v1458_v37 = vpop.eup %1457 }
 0x289   :  { %1232 = vst.msk [vmem:[%s2524_s6 + $0xe8] sm:$0xff] %vm55_vm0, %v1200_v1  ;;  %v1199_v41 = vmul.f32 %v1458_v37, %v2324_v58 }
 0x28a   :  { %v1058_v38 = vpop.xlane.xlu0 %1057 }
 0x28b   :  { %1231 = vst.msk [vmem:[%s2524_s6 + $0xe0] sm:$0xff] %vm55_vm0, %v1199_v41  ;;  %v1122_v52 = vmax.f32 %v1058_v38, 1e-24 }
 0x28c   :  { %v1055_v40 = vpop.xlane.xlu1 %1054 }
 0x28d   :  { %1459 = vrsqrt.f32 %v1122_v52  ;;  %v1121_v6 = vmax.f32 %v1055_v40, 1e-24 }
 0x28e   :  { %v1106_v47 = vpop.xlane.xlu0 %1105 }
 0x28f   :  { %1461 = vrsqrt.f32 %v1121_v6  ;;  %v1138_v45 = vmax.f32 %v1106_v47, 1e-24 }
 0x290   :  { %v1103_v51 = vpop.xlane.xlu1 %1102 }
 0x291   :  { %1463 = vrsqrt.f32 %v1138_v45  ;;  %v1137_v54 = vmax.f32 %v1103_v51, 1e-24 }
 0x293   :  { %1465 = vrsqrt.f32 %v1137_v54 }
 0x29a   :  { %v1460_v16 = vpop.eup %1459 }
 0x29b   :  { %v1186_v58 = vmul.f32 %v1460_v16, %v2356_v32 }
 0x29c   :  { %v1462_v56 = vpop.eup %1461 }
 0x29d   :  { %1218 = vst.msk [vmem:[%s2524_s6 + $0x78] sm:$0xff] %vm55_vm0, %v1186_v58  ;;  %v1185_v20 = vmul.f32 %v1462_v56, %v2364_v39 }
 0x29e   :  { %v1464_v57 = vpop.eup %1463 }
 0x29f   :  { %1217 = vst.msk [vmem:[%s2524_s6 + $0x70] sm:$0xff] %vm55_vm0, %v1185_v20  ;;  %v1202_v29 = vmul.f32 %v1464_v57, %v2359_v34 }
 0x2a0   :  { %v1466_v59 = vpop.eup %1465 }
 0x2a1   :  { %1234 = vst.msk [vmem:[%s2524_s6 + $0xf8] sm:$0xff] %vm55_vm0, %v1202_v29  ;;  %v1201_v32 = vmul.f32 %v1466_v59, %v2368_v42 }
 0x2a3   :  { %1233 = vst.msk [vmem:[%s2524_s6 + $0xf0] sm:$0xff] %vm55_vm0, %v1201_v32 }

</bundles_post_ra>
